<compile_context>
chip_gen: v7x
topology: tpu7x:2x2x1
jax: 0.10.0
libtpu: 0.0.40
codegen_flags: <defaults>
</compile_context>

<pallas_src>
import functools
import math

import jax
import jax.numpy as jnp
import numpy as np
from jax import lax
from jax.experimental import pallas as pl
from jax.experimental.pallas import tpu as pltpu


def _scan_inplace(buf_ref, d_ref, rate):
    """In-place forward + backward recursive filter along axis 0 of buf_ref.

    buf_ref : VMEM (S, L) image plane, S = scan axis (multiple of 8)
    d_ref   : VMEM (S, L) domain derivative in the same orientation
    rate    : python float, -sqrt(2)/sigma  (so V = exp(rate * D) = a**D)
    """
    S, L = buf_ref.shape
    nb = S // 8

    # ---- forward sweep: o[i] = x[i] + V[i] * (o[i-1] - x[i]) ----
    def fwd_block(b, prev):
        i0 = pl.multiple_of(b * 8, 8)
        xb = buf_ref[pl.ds(i0, 8), :]                    # one (8, L) load
        vb = jnp.exp(rate * d_ref[pl.ds(i0, 8), :])      # V on the fly (EUP)
        rows = []
        for r in range(8):                               # unrolled, register carry
            xi = xb[r:r + 1, :]
            cur = xi + vb[r:r + 1, :] * (prev - xi)
            rows.append(cur)
            prev = cur
        buf_ref[pl.ds(i0, 8), :] = jnp.concatenate(rows, axis=0)  # one (8, L) store
        return prev

    # prev == x[0] makes row 0 a no-op (reference loop starts at i = 1).
    lax.fori_loop(0, nb, fwd_block, buf_ref[pl.ds(0, 1), :])

    # ---- backward sweep: o[i] = o[i] + V[i+1] * (o[i+1] - o[i]) ----
    def bwd_block(bi, carry):
        o_next, v_next = carry                           # o[i+1], V[i+1]
        b = nb - 1 - bi
        i0 = pl.multiple_of(b * 8, 8)
        ob = buf_ref[pl.ds(i0, 8), :]
        vb = jnp.exp(rate * d_ref[pl.ds(i0, 8), :])
        rows = [None] * 8
        for r in range(7, -1, -1):
            oi = ob[r:r + 1, :]
            cur = oi + v_next * (o_next - oi)
            rows[r] = cur
            o_next = cur
            v_next = vb[r:r + 1, :]
        buf_ref[pl.ds(i0, 8), :] = jnp.concatenate(rows, axis=0)
        return o_next, v_next

    zero = jnp.zeros((1, L), jnp.float32)
    # v_next == 0 makes the last row a no-op (reference loop starts at S - 2).
    lax.fori_loop(0, nb, bwd_block, (zero, zero))


def _domain_transform_kernel(x_ref, d_ref, o_ref, buf_ref, dt_ref, *, rates):
    """One (Hp, Wp) image plane; all iterations, H + V passes fused."""
    # Transposed D, reused by the horizontal pass of every iteration.
    dt_ref[...] = jnp.transpose(d_ref[...], (1, 0))

    for it, rate in enumerate(rates):
        src_ref = x_ref if it == 0 else o_ref
        # Horizontal pass (recursion along W): scan the transposed plane.
        buf_ref[...] = jnp.transpose(src_ref[...], (1, 0))
        _scan_inplace(buf_ref, dt_ref, rate)
        o_ref[...] = jnp.transpose(buf_ref[...], (1, 0))
        # Vertical pass (recursion along H): scan in place on the output block.
        _scan_inplace(o_ref, d_ref, rate)


def _round_up(x, m):
    return ((x + m - 1) // m) * m


_PAD_D = 1e20  # exp(rate * 1e20) == 0 exactly -> padding never leaks into real pixels


def domain_transform(img, edge, sigma_s=60.0, sigma_r=0.4, iter_num=2):
    """JAX/Pallas equivalent of Domain_Transform.forward (NCHW inputs)."""
    img = img.astype(jnp.float32)
    if iter_num <= 0:
        return img
    B, C, H, W = img.shape
    dHdx = 1.0 + (sigma_s / sigma_r) * edge.astype(jnp.float32)

    sqr3 = math.sqrt(3.0)
    rates = tuple(
        -math.sqrt(2.0)
        / (sigma_s * sqr3 * (2.0 ** (iter_num - (i + 1)))
           / math.sqrt(4.0 ** iter_num - 1.0))
        for i in range(iter_num)
    )

    # Pad (H, W) to multiples of 128 so both scan orientations are
    # (8, 128)-aligned: unmasked lane-dense stores and natively tiled
    # in-kernel transposes.
    Hp, Wp = _round_up(H, 128), _round_up(W, 128)
    pad = ((0, 0), (0, Hp - H), (0, Wp - W))
    xp = jnp.pad(img.reshape(B * C, H, W), pad)
    dp = jnp.pad(dHdx.reshape(B * C, H, W), pad, constant_values=_PAD_D)

    # TODO(synk): planes whose (Hp, Wp) working set exceeds VMEM would need the
    # N-tiled per-axis fallback; typical image sizes fit comfortably.
    out = pl.pallas_call(
        functools.partial(_domain_transform_kernel, rates=rates),
        out_shape=jax.ShapeDtypeStruct((B * C, Hp, Wp), jnp.float32),
        grid_spec=pltpu.PrefetchScalarGridSpec(
            num_scalar_prefetch=0,
            grid=(B * C,),
            in_specs=[
                pl.BlockSpec((None, Hp, Wp), lambda i: (i, 0, 0)),  # image plane
                pl.BlockSpec((None, Hp, Wp), lambda i: (i, 0, 0)),  # dHdx plane
            ],
            out_specs=pl.BlockSpec((None, Hp, Wp), lambda i: (i, 0, 0)),
            scratch_shapes=[
                pltpu.VMEM((Wp, Hp), jnp.float32),  # transposed working plane
                pltpu.VMEM((Wp, Hp), jnp.float32),  # transposed dHdx
            ],
        ),
        compiler_params=pltpu.CompilerParams(
            dimension_semantics=("parallel",)),
    )(xp, dp)

    return out[:, :H, :W].reshape(B, C, H, W)


def _reference_domain_transform(img, edge, sigma_s, sigma_r, iter_num):
    """Pure-numpy transcription of the PyTorch module (float32)."""
    img = np.array(img, dtype=np.float32).copy()
    dHdx = (1.0 + sigma_s / sigma_r * np.array(edge, dtype=np.float32))
    dVdy = np.transpose(dHdx, (0, 1, 3, 2))

    def rf(x, D, sigma):
        a = np.float32(math.exp(-math.sqrt(2.0) / sigma))
        V = np.power(a, D)
        w = x.shape[-1]
        for i in range(1, w):
            x[..., i] = x[..., i] + V[..., i] * (x[..., i - 1] - x[..., i])
        for i in range(w - 2, -1, -1):
            x[..., i] = x[..., i] + V[..., i + 1] * (x[..., i + 1] - x[..., i])
        return x

    for i in range(iter_num):
        sigma_i = (
            sigma_s * math.sqrt(3.0) * 2.0 ** (iter_num - (i + 1))
            / math.sqrt(4.0 ** iter_num - 1.0)
        )
        img = rf(img, dHdx, sigma_i)
        img = np.transpose(img, (0, 1, 3, 2))
        img = rf(img, dVdy, sigma_i)
        img = np.transpose(img, (0, 1, 3, 2))
    return img


if __name__ == "__main__":
    B, C, H, W = 2, 4, 16, 16
    sigma_s, sigma_r, iter_num = 60.0, 0.4, 2

    key = jax.random.PRNGKey(0)
    k_img, k_edge = jax.random.split(key)
    img = jax.random.normal(k_img, (B, C, H, W), dtype=jnp.float32)
    edge = jax.random.uniform(k_edge, (B, C, H, W), dtype=jnp.float32)

    out = domain_transform(img, edge, sigma_s, sigma_r, iter_num)
    out = jax.block_until_ready(out)

    ref = _reference_domain_transform(
        np.asarray(img), np.asarray(edge), sigma_s, sigma_r, iter_num
    )
    np.testing.assert_allclose(np.asarray(out), ref, rtol=2e-4, atol=2e-4)

    print("KERNEL_OK")
</pallas_src>

<mosaic_0001>
module attributes {stable_mosaic.version = 11 : i64} {
  func.func @_domain_transform_kernel(%arg0: i32, %arg1: memref<1x128x128xf32, #tpu.memory_space<vmem>>, %arg2: memref<1x128x128xf32, #tpu.memory_space<vmem>>, %arg3: memref<1x128x128xf32, #tpu.memory_space<vmem>>, %arg4: memref<128x128xf32, #tpu.memory_space<vmem>>, %arg5: memref<128x128xf32, #tpu.memory_space<vmem>>) attributes {dimension_semantics = [#tpu.dimension_semantics<parallel>], iteration_bounds = array<i64: 8>, scalar_prefetch = 0 : i64, scratch_operands = 2 : i64, tpu.core_type = #tpu.core_type<tc>, window_params = [{transform_indices = @transform_0, window_bounds = array<i64: 1, 128, 128>}, {transform_indices = @transform_1, window_bounds = array<i64: 1, 128, 128>}, {transform_indices = @transform_2, window_bounds = array<i64: 1, 128, 128>}]} {
    %c0 = arith.constant 0 : index
    %c0_0 = arith.constant 0 : index
    %c0_1 = arith.constant 0 : index
    %0 = vector.load %arg2[%c0, %c0_0, %c0_1] : memref<1x128x128xf32, #tpu.memory_space<vmem>>, vector<1x128x128xf32>
    %1 = vector.shape_cast %0 : vector<1x128x128xf32> to vector<128x128xf32>
    %2 = tpu.transpose %1, [1, 0] : vector<128x128xf32> -> vector<128x128xf32>
    %c0_2 = arith.constant 0 : index
    %c0_3 = arith.constant 0 : index
    %3 = vector.load %arg5[%c0_2, %c0_3] : memref<128x128xf32, #tpu.memory_space<vmem>>, vector<128x128xf32>
    tpu.vector_store %arg5[%c0_2, %c0_3], %2 {strides = array<i32>} : memref<128x128xf32, #tpu.memory_space<vmem>>, vector<128x128xf32>,
    %c0_4 = arith.constant 0 : index
    %c0_5 = arith.constant 0 : index
    %c0_6 = arith.constant 0 : index
    %4 = vector.load %arg1[%c0_4, %c0_5, %c0_6] : memref<1x128x128xf32, #tpu.memory_space<vmem>>, vector<1x128x128xf32>
    %5 = vector.shape_cast %4 : vector<1x128x128xf32> to vector<128x128xf32>
    %6 = tpu.transpose %5, [1, 0] : vector<128x128xf32> -> vector<128x128xf32>
    %c0_7 = arith.constant 0 : index
    %c0_8 = arith.constant 0 : index
    %7 = vector.load %arg4[%c0_7, %c0_8] : memref<128x128xf32, #tpu.memory_space<vmem>>, vector<128x128xf32>
    tpu.vector_store %arg4[%c0_7, %c0_8], %6 {strides = array<i32>} : memref<128x128xf32, #tpu.memory_space<vmem>>, vector<128x128xf32>,
    %c0_9 = arith.constant 0 : index
    %c0_10 = arith.constant 0 : index
    %8 = vector.load %arg4[%c0_9, %c0_10] : memref<128x128xf32, #tpu.memory_space<vmem>>, vector<1x128xf32>
    %c0_i32 = arith.constant 0 : i32
    %c16_i32 = arith.constant 16 : i32
    %9 = arith.addi %c0_i32, %c16_i32 : i32
    %c1_i32 = arith.constant 1 : i32
    %10 = scf.for %arg6 = %c0_i32 to %9 step %c1_i32 iter_args(%arg7 = %8) -> (vector<1x128xf32>)  : i32 {
      %c8_i32 = arith.constant 8 : i32
      %48 = arith.muli %arg6, %c8_i32 : i32
      %49 = tpu.assume_multiple %48, 8 : i32
      %50 = arith.index_cast %49 : i32 to index
      %c0_66 = arith.constant 0 : index
      %51 = vector.load %arg4[%50, %c0_66] : memref<128x128xf32, #tpu.memory_space<vmem>>, vector<8x128xf32>
      %52 = arith.index_cast %49 : i32 to index
      %c0_67 = arith.constant 0 : index
      %53 = vector.load %arg5[%52, %c0_67] : memref<128x128xf32, #tpu.memory_space<vmem>>, vector<8x128xf32>
      %cst_68 = arith.constant -0.0263523143 : f32
      %54 = vector.broadcast %cst_68 : f32 to vector<8x128xf32>
      %55 = arith.mulf %54, %53 : vector<8x128xf32>
      %56 = math.exp %55 : vector<8x128xf32>
      %57 = vector.extract_strided_slice %51 {offsets = [0, 0], sizes = [1, 128], strides = [1, 1]} : vector<8x128xf32> to vector<1x128xf32>
      %58 = vector.extract_strided_slice %56 {offsets = [0, 0], sizes = [1, 128], strides = [1, 1]} : vector<8x128xf32> to vector<1x128xf32>
      %59 = arith.subf %arg7, %57 : vector<1x128xf32>
      %60 = arith.mulf %58, %59 : vector<1x128xf32>
      %61 = arith.addf %57, %60 : vector<1x128xf32>
      %62 = vector.extract_strided_slice %51 {offsets = [1, 0], sizes = [1, 128], strides = [1, 1]} : vector<8x128xf32> to vector<1x128xf32>
      %63 = vector.extract_strided_slice %56 {offsets = [1, 0], sizes = [1, 128], strides = [1, 1]} : vector<8x128xf32> to vector<1x128xf32>
      %64 = arith.subf %61, %62 : vector<1x128xf32>
      %65 = arith.mulf %63, %64 : vector<1x128xf32>
      %66 = arith.addf %62, %65 : vector<1x128xf32>
      %67 = vector.extract_strided_slice %51 {offsets = [2, 0], sizes = [1, 128], strides = [1, 1]} : vector<8x128xf32> to vector<1x128xf32>
      %68 = vector.extract_strided_slice %56 {offsets = [2, 0], sizes = [1, 128], strides = [1, 1]} : vector<8x128xf32> to vector<1x128xf32>
      %69 = arith.subf %66, %67 : vector<1x128xf32>
      %70 = arith.mulf %68, %69 : vector<1x128xf32>
      %71 = arith.addf %67, %70 : vector<1x128xf32>
      %72 = vector.extract_strided_slice %51 {offsets = [3, 0], sizes = [1, 128], strides = [1, 1]} : vector<8x128xf32> to vector<1x128xf32>
      %73 = vector.extract_strided_slice %56 {offsets = [3, 0], sizes = [1, 128], strides = [1, 1]} : vector<8x128xf32> to vector<1x128xf32>
      %74 = arith.subf %71, %72 : vector<1x128xf32>
      %75 = arith.mulf %73, %74 : vector<1x128xf32>
      %76 = arith.addf %72, %75 : vector<1x128xf32>
      %77 = vector.extract_strided_slice %51 {offsets = [4, 0], sizes = [1, 128], strides = [1, 1]} : vector<8x128xf32> to vector<1x128xf32>
      %78 = vector.extract_strided_slice %56 {offsets = [4, 0], sizes = [1, 128], strides = [1, 1]} : vector<8x128xf32> to vector<1x128xf32>
      %79 = arith.subf %76, %77 : vector<1x128xf32>
      %80 = arith.mulf %78, %79 : vector<1x128xf32>
      %81 = arith.addf %77, %80 : vector<1x128xf32>
      %82 = vector.extract_strided_slice %51 {offsets = [5, 0], sizes = [1, 128], strides = [1, 1]} : vector<8x128xf32> to vector<1x128xf32>
      %83 = vector.extract_strided_slice %56 {offsets = [5, 0], sizes = [1, 128], strides = [1, 1]} : vector<8x128xf32> to vector<1x128xf32>
      %84 = arith.subf %81, %82 : vector<1x128xf32>
      %85 = arith.mulf %83, %84 : vector<1x128xf32>
      %86 = arith.addf %82, %85 : vector<1x128xf32>
      %87 = vector.extract_strided_slice %51 {offsets = [6, 0], sizes = [1, 128], strides = [1, 1]} : vector<8x128xf32> to vector<1x128xf32>
      %88 = vector.extract_strided_slice %56 {offsets = [6, 0], sizes = [1, 128], strides = [1, 1]} : vector<8x128xf32> to vector<1x128xf32>
      %89 = arith.subf %86, %87 : vector<1x128xf32>
      %90 = arith.mulf %88, %89 : vector<1x128xf32>
      %91 = arith.addf %87, %90 : vector<1x128xf32>
      %92 = vector.extract_strided_slice %51 {offsets = [7, 0], sizes = [1, 128], strides = [1, 1]} : vector<8x128xf32> to vector<1x128xf32>
      %93 = vector.extract_strided_slice %56 {offsets = [7, 0], sizes = [1, 128], strides = [1, 1]} : vector<8x128xf32> to vector<1x128xf32>
      %94 = arith.subf %91, %92 : vector<1x128xf32>
      %95 = arith.mulf %93, %94 : vector<1x128xf32>
      %96 = arith.addf %92, %95 : vector<1x128xf32>
      %97 = tpu.concatenate %61, %66, %71, %76, %81, %86, %91, %96 in 0 : vector<1x128xf32>, vector<1x128xf32>, vector<1x128xf32>, vector<1x128xf32>, vector<1x128xf32>, vector<1x128xf32>, vector<1x128xf32>, vector<1x128xf32> -> vector<8x128xf32>
      %98 = arith.index_cast %49 : i32 to index
      %c0_69 = arith.constant 0 : index
      %99 = vector.load %arg4[%98, %c0_69] : memref<128x128xf32, #tpu.memory_space<vmem>>, vector<8x128xf32>
      tpu.vector_store %arg4[%98, %c0_69], %97 {strides = array<i32>} : memref<128x128xf32, #tpu.memory_space<vmem>>, vector<8x128xf32>,
      scf.yield %96 : vector<1x128xf32>
    }
    %c16_i32_11 = arith.constant 16 : i32
    %cst = arith.constant 0.000000e+00 : f32
    %11 = vector.broadcast %cst : f32 to vector<1x128xf32>
    %c0_i32_12 = arith.constant 0 : i32
    %c16_i32_13 = arith.constant 16 : i32
    %12 = arith.addi %c0_i32_12, %c16_i32_13 : i32
    %c1_i32_14 = arith.constant 1 : i32
    %13:2 = scf.for %arg6 = %c0_i32_12 to %12 step %c1_i32_14 iter_args(%arg7 = %11, %arg8 = %11) -> (vector<1x128xf32>, vector<1x128xf32>)  : i32 {
      %c15_i32 = arith.constant 15 : i32
      %48 = arith.subi %c15_i32, %arg6 : i32
      %c8_i32 = arith.constant 8 : i32
      %49 = arith.muli %48, %c8_i32 : i32
      %50 = tpu.assume_multiple %49, 8 : i32
      %51 = arith.index_cast %50 : i32 to index
      %c0_66 = arith.constant 0 : index
      %52 = vector.load %arg4[%51, %c0_66] : memref<128x128xf32, #tpu.memory_space<vmem>>, vector<8x128xf32>
      %53 = arith.index_cast %50 : i32 to index
      %c0_67 = arith.constant 0 : index
      %54 = vector.load %arg5[%53, %c0_67] : memref<128x128xf32, #tpu.memory_space<vmem>>, vector<8x128xf32>
      %cst_68 = arith.constant -0.0263523143 : f32
      %55 = vector.broadcast %cst_68 : f32 to vector<8x128xf32>
      %56 = arith.mulf %55, %54 : vector<8x128xf32>
      %57 = math.exp %56 : vector<8x128xf32>
      %58 = vector.extract_strided_slice %52 {offsets = [7, 0], sizes = [1, 128], strides = [1, 1]} : vector<8x128xf32> to vector<1x128xf32>
      %59 = arith.subf %arg7, %58 : vector<1x128xf32>
      %60 = arith.mulf %arg8, %59 : vector<1x128xf32>
      %61 = arith.addf %58, %60 : vector<1x128xf32>
      %62 = vector.extract_strided_slice %57 {offsets = [7, 0], sizes = [1, 128], strides = [1, 1]} : vector<8x128xf32> to vector<1x128xf32>
      %63 = vector.extract_strided_slice %52 {offsets = [6, 0], sizes = [1, 128], strides = [1, 1]} : vector<8x128xf32> to vector<1x128xf32>
      %64 = arith.subf %61, %63 : vector<1x128xf32>
      %65 = arith.mulf %62, %64 : vector<1x128xf32>
      %66 = arith.addf %63, %65 : vector<1x128xf32>
      %67 = vector.extract_strided_slice %57 {offsets = [6, 0], sizes = [1, 128], strides = [1, 1]} : vector<8x128xf32> to vector<1x128xf32>
      %68 = vector.extract_strided_slice %52 {offsets = [5, 0], sizes = [1, 128], strides = [1, 1]} : vector<8x128xf32> to vector<1x128xf32>
      %69 = arith.subf %66, %68 : vector<1x128xf32>
      %70 = arith.mulf %67, %69 : vector<1x128xf32>
      %71 = arith.addf %68, %70 : vector<1x128xf32>
      %72 = vector.extract_strided_slice %57 {offsets = [5, 0], sizes = [1, 128], strides = [1, 1]} : vector<8x128xf32> to vector<1x128xf32>
      %73 = vector.extract_strided_slice %52 {offsets = [4, 0], sizes = [1, 128], strides = [1, 1]} : vector<8x128xf32> to vector<1x128xf32>
      %74 = arith.subf %71, %73 : vector<1x128xf32>
      %75 = arith.mulf %72, %74 : vector<1x128xf32>
      %76 = arith.addf %73, %75 : vector<1x128xf32>
      %77 = vector.extract_strided_slice %57 {offsets = [4, 0], sizes = [1, 128], strides = [1, 1]} : vector<8x128xf32> to vector<1x128xf32>
      %78 = vector.extract_strided_slice %52 {offsets = [3, 0], sizes = [1, 128], strides = [1, 1]} : vector<8x128xf32> to vector<1x128xf32>
      %79 = arith.subf %76, %78 : vector<1x128xf32>
      %80 = arith.mulf %77, %79 : vector<1x128xf32>
      %81 = arith.addf %78, %80 : vector<1x128xf32>
      %82 = vector.extract_strided_slice %57 {offsets = [3, 0], sizes = [1, 128], strides = [1, 1]} : vector<8x128xf32> to vector<1x128xf32>
      %83 = vector.extract_strided_slice %52 {offsets = [2, 0], sizes = [1, 128], strides = [1, 1]} : vector<8x128xf32> to vector<1x128xf32>
      %84 = arith.subf %81, %83 : vector<1x128xf32>
      %85 = arith.mulf %82, %84 : vector<1x128xf32>
      %86 = arith.addf %83, %85 : vector<1x128xf32>
      %87 = vector.extract_strided_slice %57 {offsets = [2, 0], sizes = [1, 128], strides = [1, 1]} : vector<8x128xf32> to vector<1x128xf32>
      %88 = vector.extract_strided_slice %52 {offsets = [1, 0], sizes = [1, 128], strides = [1, 1]} : vector<8x128xf32> to vector<1x128xf32>
      %89 = arith.subf %86, %88 : vector<1x128xf32>
      %90 = arith.mulf %87, %89 : vector<1x128xf32>
      %91 = arith.addf %88, %90 : vector<1x128xf32>
      %92 = vector.extract_strided_slice %57 {offsets = [1, 0], sizes = [1, 128], strides = [1, 1]} : vector<8x128xf32> to vector<1x128xf32>
      %93 = vector.extract_strided_slice %52 {offsets = [0, 0], sizes = [1, 128], strides = [1, 1]} : vector<8x128xf32> to vector<1x128xf32>
      %94 = arith.subf %91, %93 : vector<1x128xf32>
      %95 = arith.mulf %92, %94 : vector<1x128xf32>
      %96 = arith.addf %93, %95 : vector<1x128xf32>
      %97 = vector.extract_strided_slice %57 {offsets = [0, 0], sizes = [1, 128], strides = [1, 1]} : vector<8x128xf32> to vector<1x128xf32>
      %98 = tpu.concatenate %96, %91, %86, %81, %76, %71, %66, %61 in 0 : vector<1x128xf32>, vector<1x128xf32>, vector<1x128xf32>, vector<1x128xf32>, vector<1x128xf32>, vector<1x128xf32>, vector<1x128xf32>, vector<1x128xf32> -> vector<8x128xf32>
      %99 = arith.index_cast %50 : i32 to index
      %c0_69 = arith.constant 0 : index
      %100 = vector.load %arg4[%99, %c0_69] : memref<128x128xf32, #tpu.memory_space<vmem>>, vector<8x128xf32>
      tpu.vector_store %arg4[%99, %c0_69], %98 {strides = array<i32>} : memref<128x128xf32, #tpu.memory_space<vmem>>, vector<8x128xf32>,
      scf.yield %96, %97 : vector<1x128xf32>, vector<1x128xf32>
    }
    %c16_i32_15 = arith.constant 16 : i32
    %c0_16 = arith.constant 0 : index
    %c0_17 = arith.constant 0 : index
    %14 = vector.load %arg4[%c0_16, %c0_17] : memref<128x128xf32, #tpu.memory_space<vmem>>, vector<128x128xf32>
    %15 = tpu.transpose %14, [1, 0] : vector<128x128xf32> -> vector<128x128xf32>
    %c0_18 = arith.constant 0 : index
    %c0_19 = arith.constant 0 : index
    %c0_20 = arith.constant 0 : index
    %16 = vector.load %arg3[%c0_18, %c0_19, %c0_20] : memref<1x128x128xf32, #tpu.memory_space<vmem>>, vector<1x128x128xf32>
    %17 = vector.shape_cast %16 : vector<1x128x128xf32> to vector<128x128xf32>
    %18 = vector.shape_cast %15 : vector<128x128xf32> to vector<1x128x128xf32>
    tpu.vector_store %arg3[%c0_18, %c0_19, %c0_20], %18 {strides = array<i32>} : memref<1x128x128xf32, #tpu.memory_space<vmem>>, vector<1x128x128xf32>,
    %c0_21 = arith.constant 0 : index
    %c0_22 = arith.constant 0 : index
    %c0_23 = arith.constant 0 : index
    %19 = vector.load %arg3[%c0_21, %c0_22, %c0_23] : memref<1x128x128xf32, #tpu.memory_space<vmem>>, vector<1x1x128xf32>
    %20 = vector.shape_cast %19 : vector<1x1x128xf32> to vector<1x128xf32>
    %c0_i32_24 = arith.constant 0 : i32
    %c16_i32_25 = arith.constant 16 : i32
    %21 = arith.addi %c0_i32_24, %c16_i32_25 : i32
    %c1_i32_26 = arith.constant 1 : i32
    %22 = scf.for %arg6 = %c0_i32_24 to %21 step %c1_i32_26 iter_args(%arg7 = %20) -> (vector<1x128xf32>)  : i32 {
      %c8_i32 = arith.constant 8 : i32
      %48 = arith.muli %arg6, %c8_i32 : i32
      %49 = tpu.assume_multiple %48, 8 : i32
      %c0_66 = arith.constant 0 : index
      %50 = arith.index_cast %49 : i32 to index
      %c0_67 = arith.constant 0 : index
      %51 = vector.load %arg3[%c0_66, %50, %c0_67] : memref<1x128x128xf32, #tpu.memory_space<vmem>>, vector<1x8x128xf32>
      %52 = vector.shape_cast %51 : vector<1x8x128xf32> to vector<8x128xf32>
      %c0_68 = arith.constant 0 : index
      %53 = arith.index_cast %49 : i32 to index
      %c0_69 = arith.constant 0 : index
      %54 = vector.load %arg2[%c0_68, %53, %c0_69] : memref<1x128x128xf32, #tpu.memory_space<vmem>>, vector<1x8x128xf32>
      %55 = vector.shape_cast %54 : vector<1x8x128xf32> to vector<8x128xf32>
      %cst_70 = arith.constant -0.0263523143 : f32
      %56 = vector.broadcast %cst_70 : f32 to vector<8x128xf32>
      %57 = arith.mulf %56, %55 : vector<8x128xf32>
      %58 = math.exp %57 : vector<8x128xf32>
      %59 = vector.extract_strided_slice %52 {offsets = [0, 0], sizes = [1, 128], strides = [1, 1]} : vector<8x128xf32> to vector<1x128xf32>
      %60 = vector.extract_strided_slice %58 {offsets = [0, 0], sizes = [1, 128], strides = [1, 1]} : vector<8x128xf32> to vector<1x128xf32>
      %61 = arith.subf %arg7, %59 : vector<1x128xf32>
      %62 = arith.mulf %60, %61 : vector<1x128xf32>
      %63 = arith.addf %59, %62 : vector<1x128xf32>
      %64 = vector.extract_strided_slice %52 {offsets = [1, 0], sizes = [1, 128], strides = [1, 1]} : vector<8x128xf32> to vector<1x128xf32>
      %65 = vector.extract_strided_slice %58 {offsets = [1, 0], sizes = [1, 128], strides = [1, 1]} : vector<8x128xf32> to vector<1x128xf32>
      %66 = arith.subf %63, %64 : vector<1x128xf32>
      %67 = arith.mulf %65, %66 : vector<1x128xf32>
      %68 = arith.addf %64, %67 : vector<1x128xf32>
      %69 = vector.extract_strided_slice %52 {offsets = [2, 0], sizes = [1, 128], strides = [1, 1]} : vector<8x128xf32> to vector<1x128xf32>
      %70 = vector.extract_strided_slice %58 {offsets = [2, 0], sizes = [1, 128], strides = [1, 1]} : vector<8x128xf32> to vector<1x128xf32>
      %71 = arith.subf %68, %69 : vector<1x128xf32>
      %72 = arith.mulf %70, %71 : vector<1x128xf32>
      %73 = arith.addf %69, %72 : vector<1x128xf32>
      %74 = vector.extract_strided_slice %52 {offsets = [3, 0], sizes = [1, 128], strides = [1, 1]} : vector<8x128xf32> to vector<1x128xf32>
      %75 = vector.extract_strided_slice %58 {offsets = [3, 0], sizes = [1, 128], strides = [1, 1]} : vector<8x128xf32> to vector<1x128xf32>
      %76 = arith.subf %73, %74 : vector<1x128xf32>
      %77 = arith.mulf %75, %76 : vector<1x128xf32>
      %78 = arith.addf %74, %77 : vector<1x128xf32>
      %79 = vector.extract_strided_slice %52 {offsets = [4, 0], sizes = [1, 128], strides = [1, 1]} : vector<8x128xf32> to vector<1x128xf32>
      %80 = vector.extract_strided_slice %58 {offsets = [4, 0], sizes = [1, 128], strides = [1, 1]} : vector<8x128xf32> to vector<1x128xf32>
      %81 = arith.subf %78, %79 : vector<1x128xf32>
      %82 = arith.mulf %80, %81 : vector<1x128xf32>
      %83 = arith.addf %79, %82 : vector<1x128xf32>
      %84 = vector.extract_strided_slice %52 {offsets = [5, 0], sizes = [1, 128], strides = [1, 1]} : vector<8x128xf32> to vector<1x128xf32>
      %85 = vector.extract_strided_slice %58 {offsets = [5, 0], sizes = [1, 128], strides = [1, 1]} : vector<8x128xf32> to vector<1x128xf32>
      %86 = arith.subf %83, %84 : vector<1x128xf32>
      %87 = arith.mulf %85, %86 : vector<1x128xf32>
      %88 = arith.addf %84, %87 : vector<1x128xf32>
      %89 = vector.extract_strided_slice %52 {offsets = [6, 0], sizes = [1, 128], strides = [1, 1]} : vector<8x128xf32> to vector<1x128xf32>
      %90 = vector.extract_strided_slice %58 {offsets = [6, 0], sizes = [1, 128], strides = [1, 1]} : vector<8x128xf32> to vector<1x128xf32>
      %91 = arith.subf %88, %89 : vector<1x128xf32>
      %92 = arith.mulf %90, %91 : vector<1x128xf32>
      %93 = arith.addf %89, %92 : vector<1x128xf32>
      %94 = vector.extract_strided_slice %52 {offsets = [7, 0], sizes = [1, 128], strides = [1, 1]} : vector<8x128xf32> to vector<1x128xf32>
      %95 = vector.extract_strided_slice %58 {offsets = [7, 0], sizes = [1, 128], strides = [1, 1]} : vector<8x128xf32> to vector<1x128xf32>
      %96 = arith.subf %93, %94 : vector<1x128xf32>
      %97 = arith.mulf %95, %96 : vector<1x128xf32>
      %98 = arith.addf %94, %97 : vector<1x128xf32>
      %99 = tpu.concatenate %63, %68, %73, %78, %83, %88, %93, %98 in 0 : vector<1x128xf32>, vector<1x128xf32>, vector<1x128xf32>, vector<1x128xf32>, vector<1x128xf32>, vector<1x128xf32>, vector<1x128xf32>, vector<1x128xf32> -> vector<8x128xf32>
      %c0_71 = arith.constant 0 : index
      %100 = arith.index_cast %49 : i32 to index
      %c0_72 = arith.constant 0 : index
      %101 = vector.load %arg3[%c0_71, %100, %c0_72] : memref<1x128x128xf32, #tpu.memory_space<vmem>>, vector<1x8x128xf32>
      %102 = vector.shape_cast %101 : vector<1x8x128xf32> to vector<8x128xf32>
      %103 = vector.shape_cast %99 : vector<8x128xf32> to vector<1x8x128xf32>
      tpu.vector_store %arg3[%c0_71, %100, %c0_72], %103 {strides = array<i32>} : memref<1x128x128xf32, #tpu.memory_space<vmem>>, vector<1x8x128xf32>,
      scf.yield %98 : vector<1x128xf32>
    }
    %c16_i32_27 = arith.constant 16 : i32
    %cst_28 = arith.constant 0.000000e+00 : f32
    %23 = vector.broadcast %cst_28 : f32 to vector<1x128xf32>
    %c0_i32_29 = arith.constant 0 : i32
    %c16_i32_30 = arith.constant 16 : i32
    %24 = arith.addi %c0_i32_29, %c16_i32_30 : i32
    %c1_i32_31 = arith.constant 1 : i32
    %25:2 = scf.for %arg6 = %c0_i32_29 to %24 step %c1_i32_31 iter_args(%arg7 = %23, %arg8 = %23) -> (vector<1x128xf32>, vector<1x128xf32>)  : i32 {
      %c15_i32 = arith.constant 15 : i32
      %48 = arith.subi %c15_i32, %arg6 : i32
      %c8_i32 = arith.constant 8 : i32
      %49 = arith.muli %48, %c8_i32 : i32
      %50 = tpu.assume_multiple %49, 8 : i32
      %c0_66 = arith.constant 0 : index
      %51 = arith.index_cast %50 : i32 to index
      %c0_67 = arith.constant 0 : index
      %52 = vector.load %arg3[%c0_66, %51, %c0_67] : memref<1x128x128xf32, #tpu.memory_space<vmem>>, vector<1x8x128xf32>
      %53 = vector.shape_cast %52 : vector<1x8x128xf32> to vector<8x128xf32>
      %c0_68 = arith.constant 0 : index
      %54 = arith.index_cast %50 : i32 to index
      %c0_69 = arith.constant 0 : index
      %55 = vector.load %arg2[%c0_68, %54, %c0_69] : memref<1x128x128xf32, #tpu.memory_space<vmem>>, vector<1x8x128xf32>
      %56 = vector.shape_cast %55 : vector<1x8x128xf32> to vector<8x128xf32>
      %cst_70 = arith.constant -0.0263523143 : f32
      %57 = vector.broadcast %cst_70 : f32 to vector<8x128xf32>
      %58 = arith.mulf %57, %56 : vector<8x128xf32>
      %59 = math.exp %58 : vector<8x128xf32>
      %60 = vector.extract_strided_slice %53 {offsets = [7, 0], sizes = [1, 128], strides = [1, 1]} : vector<8x128xf32> to vector<1x128xf32>
      %61 = arith.subf %arg7, %60 : vector<1x128xf32>
      %62 = arith.mulf %arg8, %61 : vector<1x128xf32>
      %63 = arith.addf %60, %62 : vector<1x128xf32>
      %64 = vector.extract_strided_slice %59 {offsets = [7, 0], sizes = [1, 128], strides = [1, 1]} : vector<8x128xf32> to vector<1x128xf32>
      %65 = vector.extract_strided_slice %53 {offsets = [6, 0], sizes = [1, 128], strides = [1, 1]} : vector<8x128xf32> to vector<1x128xf32>
      %66 = arith.subf %63, %65 : vector<1x128xf32>
      %67 = arith.mulf %64, %66 : vector<1x128xf32>
      %68 = arith.addf %65, %67 : vector<1x128xf32>
      %69 = vector.extract_strided_slice %59 {offsets = [6, 0], sizes = [1, 128], strides = [1, 1]} : vector<8x128xf32> to vector<1x128xf32>
      %70 = vector.extract_strided_slice %53 {offsets = [5, 0], sizes = [1, 128], strides = [1, 1]} : vector<8x128xf32> to vector<1x128xf32>
      %71 = arith.subf %68, %70 : vector<1x128xf32>
      %72 = arith.mulf %69, %71 : vector<1x128xf32>
      %73 = arith.addf %70, %72 : vector<1x128xf32>
      %74 = vector.extract_strided_slice %59 {offsets = [5, 0], sizes = [1, 128], strides = [1, 1]} : vector<8x128xf32> to vector<1x128xf32>
      %75 = vector.extract_strided_slice %53 {offsets = [4, 0], sizes = [1, 128], strides = [1, 1]} : vector<8x128xf32> to vector<1x128xf32>
      %76 = arith.subf %73, %75 : vector<1x128xf32>
      %77 = arith.mulf %74, %76 : vector<1x128xf32>
      %78 = arith.addf %75, %77 : vector<1x128xf32>
      %79 = vector.extract_strided_slice %59 {offsets = [4, 0], sizes = [1, 128], strides = [1, 1]} : vector<8x128xf32> to vector<1x128xf32>
      %80 = vector.extract_strided_slice %53 {offsets = [3, 0], sizes = [1, 128], strides = [1, 1]} : vector<8x128xf32> to vector<1x128xf32>
      %81 = arith.subf %78, %80 : vector<1x128xf32>
      %82 = arith.mulf %79, %81 : vector<1x128xf32>
      %83 = arith.addf %80, %82 : vector<1x128xf32>
      %84 = vector.extract_strided_slice %59 {offsets = [3, 0], sizes = [1, 128], strides = [1, 1]} : vector<8x128xf32> to vector<1x128xf32>
      %85 = vector.extract_strided_slice %53 {offsets = [2, 0], sizes = [1, 128], strides = [1, 1]} : vector<8x128xf32> to vector<1x128xf32>
      %86 = arith.subf %83, %85 : vector<1x128xf32>
      %87 = arith.mulf %84, %86 : vector<1x128xf32>
      %88 = arith.addf %85, %87 : vector<1x128xf32>
      %89 = vector.extract_strided_slice %59 {offsets = [2, 0], sizes = [1, 128], strides = [1, 1]} : vector<8x128xf32> to vector<1x128xf32>
      %90 = vector.extract_strided_slice %53 {offsets = [1, 0], sizes = [1, 128], strides = [1, 1]} : vector<8x128xf32> to vector<1x128xf32>
      %91 = arith.subf %88, %90 : vector<1x128xf32>
      %92 = arith.mulf %89, %91 : vector<1x128xf32>
      %93 = arith.addf %90, %92 : vector<1x128xf32>
      %94 = vector.extract_strided_slice %59 {offsets = [1, 0], sizes = [1, 128], strides = [1, 1]} : vector<8x128xf32> to vector<1x128xf32>
      %95 = vector.extract_strided_slice %53 {offsets = [0, 0], sizes = [1, 128], strides = [1, 1]} : vector<8x128xf32> to vector<1x128xf32>
      %96 = arith.subf %93, %95 : vector<1x128xf32>
      %97 = arith.mulf %94, %96 : vector<1x128xf32>
      %98 = arith.addf %95, %97 : vector<1x128xf32>
      %99 = vector.extract_strided_slice %59 {offsets = [0, 0], sizes = [1, 128], strides = [1, 1]} : vector<8x128xf32> to vector<1x128xf32>
      %100 = tpu.concatenate %98, %93, %88, %83, %78, %73, %68, %63 in 0 : vector<1x128xf32>, vector<1x128xf32>, vector<1x128xf32>, vector<1x128xf32>, vector<1x128xf32>, vector<1x128xf32>, vector<1x128xf32>, vector<1x128xf32> -> vector<8x128xf32>
      %c0_71 = arith.constant 0 : index
      %101 = arith.index_cast %50 : i32 to index
      %c0_72 = arith.constant 0 : index
      %102 = vector.load %arg3[%c0_71, %101, %c0_72] : memref<1x128x128xf32, #tpu.memory_space<vmem>>, vector<1x8x128xf32>
      %103 = vector.shape_cast %102 : vector<1x8x128xf32> to vector<8x128xf32>
      %104 = vector.shape_cast %100 : vector<8x128xf32> to vector<1x8x128xf32>
      tpu.vector_store %arg3[%c0_71, %101, %c0_72], %104 {strides = array<i32>} : memref<1x128x128xf32, #tpu.memory_space<vmem>>, vector<1x8x128xf32>,
      scf.yield %98, %99 : vector<1x128xf32>, vector<1x128xf32>
    }
    %c16_i32_32 = arith.constant 16 : i32
    %c0_33 = arith.constant 0 : index
    %c0_34 = arith.constant 0 : index
    %c0_35 = arith.constant 0 : index
    %26 = vector.load %arg3[%c0_33, %c0_34, %c0_35] : memref<1x128x128xf32, #tpu.memory_space<vmem>>, vector<1x128x128xf32>
    %27 = vector.shape_cast %26 : vector<1x128x128xf32> to vector<128x128xf32>
    %28 = tpu.transpose %27, [1, 0] : vector<128x128xf32> -> vector<128x128xf32>
    %c0_36 = arith.constant 0 : index
    %c0_37 = arith.constant 0 : index
    %29 = vector.load %arg4[%c0_36, %c0_37] : memref<128x128xf32, #tpu.memory_space<vmem>>, vector<128x128xf32>
    tpu.vector_store %arg4[%c0_36, %c0_37], %28 {strides = array<i32>} : memref<128x128xf32, #tpu.memory_space<vmem>>, vector<128x128xf32>,
    %c0_38 = arith.constant 0 : index
    %c0_39 = arith.constant 0 : index
    %30 = vector.load %arg4[%c0_38, %c0_39] : memref<128x128xf32, #tpu.memory_space<vmem>>, vector<1x128xf32>
    %c0_i32_40 = arith.constant 0 : i32
    %c16_i32_41 = arith.constant 16 : i32
    %31 = arith.addi %c0_i32_40, %c16_i32_41 : i32
    %c1_i32_42 = arith.constant 1 : i32
    %32 = scf.for %arg6 = %c0_i32_40 to %31 step %c1_i32_42 iter_args(%arg7 = %30) -> (vector<1x128xf32>)  : i32 {
      %c8_i32 = arith.constant 8 : i32
      %48 = arith.muli %arg6, %c8_i32 : i32
      %49 = tpu.assume_multiple %48, 8 : i32
      %50 = arith.index_cast %49 : i32 to index
      %c0_66 = arith.constant 0 : index
      %51 = vector.load %arg4[%50, %c0_66] : memref<128x128xf32, #tpu.memory_space<vmem>>, vector<8x128xf32>
      %52 = arith.index_cast %49 : i32 to index
      %c0_67 = arith.constant 0 : index
      %53 = vector.load %arg5[%52, %c0_67] : memref<128x128xf32, #tpu.memory_space<vmem>>, vector<8x128xf32>
      %cst_68 = arith.constant -0.0527046286 : f32
      %54 = vector.broadcast %cst_68 : f32 to vector<8x128xf32>
      %55 = arith.mulf %54, %53 : vector<8x128xf32>
      %56 = math.exp %55 : vector<8x128xf32>
      %57 = vector.extract_strided_slice %51 {offsets = [0, 0], sizes = [1, 128], strides = [1, 1]} : vector<8x128xf32> to vector<1x128xf32>
      %58 = vector.extract_strided_slice %56 {offsets = [0, 0], sizes = [1, 128], strides = [1, 1]} : vector<8x128xf32> to vector<1x128xf32>
      %59 = arith.subf %arg7, %57 : vector<1x128xf32>
      %60 = arith.mulf %58, %59 : vector<1x128xf32>
      %61 = arith.addf %57, %60 : vector<1x128xf32>
      %62 = vector.extract_strided_slice %51 {offsets = [1, 0], sizes = [1, 128], strides = [1, 1]} : vector<8x128xf32> to vector<1x128xf32>
      %63 = vector.extract_strided_slice %56 {offsets = [1, 0], sizes = [1, 128], strides = [1, 1]} : vector<8x128xf32> to vector<1x128xf32>
      %64 = arith.subf %61, %62 : vector<1x128xf32>
      %65 = arith.mulf %63, %64 : vector<1x128xf32>
      %66 = arith.addf %62, %65 : vector<1x128xf32>
      %67 = vector.extract_strided_slice %51 {offsets = [2, 0], sizes = [1, 128], strides = [1, 1]} : vector<8x128xf32> to vector<1x128xf32>
      %68 = vector.extract_strided_slice %56 {offsets = [2, 0], sizes = [1, 128], strides = [1, 1]} : vector<8x128xf32> to vector<1x128xf32>
      %69 = arith.subf %66, %67 : vector<1x128xf32>
      %70 = arith.mulf %68, %69 : vector<1x128xf32>
      %71 = arith.addf %67, %70 : vector<1x128xf32>
      %72 = vector.extract_strided_slice %51 {offsets = [3, 0], sizes = [1, 128], strides = [1, 1]} : vector<8x128xf32> to vector<1x128xf32>
      %73 = vector.extract_strided_slice %56 {offsets = [3, 0], sizes = [1, 128], strides = [1, 1]} : vector<8x128xf32> to vector<1x128xf32>
      %74 = arith.subf %71, %72 : vector<1x128xf32>
      %75 = arith.mulf %73, %74 : vector<1x128xf32>
      %76 = arith.addf %72, %75 : vector<1x128xf32>
      %77 = vector.extract_strided_slice %51 {offsets = [4, 0], sizes = [1, 128], strides = [1, 1]} : vector<8x128xf32> to vector<1x128xf32>
      %78 = vector.extract_strided_slice %56 {offsets = [4, 0], sizes = [1, 128], strides = [1, 1]} : vector<8x128xf32> to vector<1x128xf32>
      %79 = arith.subf %76, %77 : vector<1x128xf32>
      %80 = arith.mulf %78, %79 : vector<1x128xf32>
      %81 = arith.addf %77, %80 : vector<1x128xf32>
      %82 = vector.extract_strided_slice %51 {offsets = [5, 0], sizes = [1, 128], strides = [1, 1]} : vector<8x128xf32> to vector<1x128xf32>
      %83 = vector.extract_strided_slice %56 {offsets = [5, 0], sizes = [1, 128], strides = [1, 1]} : vector<8x128xf32> to vector<1x128xf32>
      %84 = arith.subf %81, %82 : vector<1x128xf32>
      %85 = arith.mulf %83, %84 : vector<1x128xf32>
      %86 = arith.addf %82, %85 : vector<1x128xf32>
      %87 = vector.extract_strided_slice %51 {offsets = [6, 0], sizes = [1, 128], strides = [1, 1]} : vector<8x128xf32> to vector<1x128xf32>
      %88 = vector.extract_strided_slice %56 {offsets = [6, 0], sizes = [1, 128], strides = [1, 1]} : vector<8x128xf32> to vector<1x128xf32>
      %89 = arith.subf %86, %87 : vector<1x128xf32>
      %90 = arith.mulf %88, %89 : vector<1x128xf32>
      %91 = arith.addf %87, %90 : vector<1x128xf32>
      %92 = vector.extract_strided_slice %51 {offsets = [7, 0], sizes = [1, 128], strides = [1, 1]} : vector<8x128xf32> to vector<1x128xf32>
      %93 = vector.extract_strided_slice %56 {offsets = [7, 0], sizes = [1, 128], strides = [1, 1]} : vector<8x128xf32> to vector<1x128xf32>
      %94 = arith.subf %91, %92 : vector<1x128xf32>
      %95 = arith.mulf %93, %94 : vector<1x128xf32>
      %96 = arith.addf %92, %95 : vector<1x128xf32>
      %97 = tpu.concatenate %61, %66, %71, %76, %81, %86, %91, %96 in 0 : vector<1x128xf32>, vector<1x128xf32>, vector<1x128xf32>, vector<1x128xf32>, vector<1x128xf32>, vector<1x128xf32>, vector<1x128xf32>, vector<1x128xf32> -> vector<8x128xf32>
      %98 = arith.index_cast %49 : i32 to index
      %c0_69 = arith.constant 0 : index
      %99 = vector.load %arg4[%98, %c0_69] : memref<128x128xf32, #tpu.memory_space<vmem>>, vector<8x128xf32>
      tpu.vector_store %arg4[%98, %c0_69], %97 {strides = array<i32>} : memref<128x128xf32, #tpu.memory_space<vmem>>, vector<8x128xf32>,
      scf.yield %96 : vector<1x128xf32>
    }
    %c16_i32_43 = arith.constant 16 : i32
    %cst_44 = arith.constant 0.000000e+00 : f32
    %33 = vector.broadcast %cst_44 : f32 to vector<1x128xf32>
    %c0_i32_45 = arith.constant 0 : i32
    %c16_i32_46 = arith.constant 16 : i32
    %34 = arith.addi %c0_i32_45, %c16_i32_46 : i32
    %c1_i32_47 = arith.constant 1 : i32
    %35:2 = scf.for %arg6 = %c0_i32_45 to %34 step %c1_i32_47 iter_args(%arg7 = %33, %arg8 = %33) -> (vector<1x128xf32>, vector<1x128xf32>)  : i32 {
      %c15_i32 = arith.constant 15 : i32
      %48 = arith.subi %c15_i32, %arg6 : i32
      %c8_i32 = arith.constant 8 : i32
      %49 = arith.muli %48, %c8_i32 : i32
      %50 = tpu.assume_multiple %49, 8 : i32
      %51 = arith.index_cast %50 : i32 to index
      %c0_66 = arith.constant 0 : index
      %52 = vector.load %arg4[%51, %c0_66] : memref<128x128xf32, #tpu.memory_space<vmem>>, vector<8x128xf32>
      %53 = arith.index_cast %50 : i32 to index
      %c0_67 = arith.constant 0 : index
      %54 = vector.load %arg5[%53, %c0_67] : memref<128x128xf32, #tpu.memory_space<vmem>>, vector<8x128xf32>
      %cst_68 = arith.constant -0.0527046286 : f32
      %55 = vector.broadcast %cst_68 : f32 to vector<8x128xf32>
      %56 = arith.mulf %55, %54 : vector<8x128xf32>
      %57 = math.exp %56 : vector<8x128xf32>
      %58 = vector.extract_strided_slice %52 {offsets = [7, 0], sizes = [1, 128], strides = [1, 1]} : vector<8x128xf32> to vector<1x128xf32>
      %59 = arith.subf %arg7, %58 : vector<1x128xf32>
      %60 = arith.mulf %arg8, %59 : vector<1x128xf32>
      %61 = arith.addf %58, %60 : vector<1x128xf32>
      %62 = vector.extract_strided_slice %57 {offsets = [7, 0], sizes = [1, 128], strides = [1, 1]} : vector<8x128xf32> to vector<1x128xf32>
      %63 = vector.extract_strided_slice %52 {offsets = [6, 0], sizes = [1, 128], strides = [1, 1]} : vector<8x128xf32> to vector<1x128xf32>
      %64 = arith.subf %61, %63 : vector<1x128xf32>
      %65 = arith.mulf %62, %64 : vector<1x128xf32>
      %66 = arith.addf %63, %65 : vector<1x128xf32>
      %67 = vector.extract_strided_slice %57 {offsets = [6, 0], sizes = [1, 128], strides = [1, 1]} : vector<8x128xf32> to vector<1x128xf32>
      %68 = vector.extract_strided_slice %52 {offsets = [5, 0], sizes = [1, 128], strides = [1, 1]} : vector<8x128xf32> to vector<1x128xf32>
      %69 = arith.subf %66, %68 : vector<1x128xf32>
      %70 = arith.mulf %67, %69 : vector<1x128xf32>
      %71 = arith.addf %68, %70 : vector<1x128xf32>
      %72 = vector.extract_strided_slice %57 {offsets = [5, 0], sizes = [1, 128], strides = [1, 1]} : vector<8x128xf32> to vector<1x128xf32>
      %73 = vector.extract_strided_slice %52 {offsets = [4, 0], sizes = [1, 128], strides = [1, 1]} : vector<8x128xf32> to vector<1x128xf32>
      %74 = arith.subf %71, %73 : vector<1x128xf32>
      %75 = arith.mulf %72, %74 : vector<1x128xf32>
      %76 = arith.addf %73, %75 : vector<1x128xf32>
      %77 = vector.extract_strided_slice %57 {offsets = [4, 0], sizes = [1, 128], strides = [1, 1]} : vector<8x128xf32> to vector<1x128xf32>
      %78 = vector.extract_strided_slice %52 {offsets = [3, 0], sizes = [1, 128], strides = [1, 1]} : vector<8x128xf32> to vector<1x128xf32>
      %79 = arith.subf %76, %78 : vector<1x128xf32>
      %80 = arith.mulf %77, %79 : vector<1x128xf32>
      %81 = arith.addf %78, %80 : vector<1x128xf32>
      %82 = vector.extract_strided_slice %57 {offsets = [3, 0], sizes = [1, 128], strides = [1, 1]} : vector<8x128xf32> to vector<1x128xf32>
      %83 = vector.extract_strided_slice %52 {offsets = [2, 0], sizes = [1, 128], strides = [1, 1]} : vector<8x128xf32> to vector<1x128xf32>
      %84 = arith.subf %81, %83 : vector<1x128xf32>
      %85 = arith.mulf %82, %84 : vector<1x128xf32>
      %86 = arith.addf %83, %85 : vector<1x128xf32>
      %87 = vector.extract_strided_slice %57 {offsets = [2, 0], sizes = [1, 128], strides = [1, 1]} : vector<8x128xf32> to vector<1x128xf32>
      %88 = vector.extract_strided_slice %52 {offsets = [1, 0], sizes = [1, 128], strides = [1, 1]} : vector<8x128xf32> to vector<1x128xf32>
      %89 = arith.subf %86, %88 : vector<1x128xf32>
      %90 = arith.mulf %87, %89 : vector<1x128xf32>
      %91 = arith.addf %88, %90 : vector<1x128xf32>
      %92 = vector.extract_strided_slice %57 {offsets = [1, 0], sizes = [1, 128], strides = [1, 1]} : vector<8x128xf32> to vector<1x128xf32>
      %93 = vector.extract_strided_slice %52 {offsets = [0, 0], sizes = [1, 128], strides = [1, 1]} : vector<8x128xf32> to vector<1x128xf32>
      %94 = arith.subf %91, %93 : vector<1x128xf32>
      %95 = arith.mulf %92, %94 : vector<1x128xf32>
      %96 = arith.addf %93, %95 : vector<1x128xf32>
      %97 = vector.extract_strided_slice %57 {offsets = [0, 0], sizes = [1, 128], strides = [1, 1]} : vector<8x128xf32> to vector<1x128xf32>
      %98 = tpu.concatenate %96, %91, %86, %81, %76, %71, %66, %61 in 0 : vector<1x128xf32>, vector<1x128xf32>, vector<1x128xf32>, vector<1x128xf32>, vector<1x128xf32>, vector<1x128xf32>, vector<1x128xf32>, vector<1x128xf32> -> vector<8x128xf32>
      %99 = arith.index_cast %50 : i32 to index
      %c0_69 = arith.constant 0 : index
      %100 = vector.load %arg4[%99, %c0_69] : memref<128x128xf32, #tpu.memory_space<vmem>>, vector<8x128xf32>
      tpu.vector_store %arg4[%99, %c0_69], %98 {strides = array<i32>} : memref<128x128xf32, #tpu.memory_space<vmem>>, vector<8x128xf32>,
      scf.yield %96, %97 : vector<1x128xf32>, vector<1x128xf32>
    }
    %c16_i32_48 = arith.constant 16 : i32
    %c0_49 = arith.constant 0 : index
    %c0_50 = arith.constant 0 : index
    %36 = vector.load %arg4[%c0_49, %c0_50] : memref<128x128xf32, #tpu.memory_space<vmem>>, vector<128x128xf32>
    %37 = tpu.transpose %36, [1, 0] : vector<128x128xf32> -> vector<128x128xf32>
    %c0_51 = arith.constant 0 : index
    %c0_52 = arith.constant 0 : index
    %c0_53 = arith.constant 0 : index
    %38 = vector.load %arg3[%c0_51, %c0_52, %c0_53] : memref<1x128x128xf32, #tpu.memory_space<vmem>>, vector<1x128x128xf32>
    %39 = vector.shape_cast %38 : vector<1x128x128xf32> to vector<128x128xf32>
    %40 = vector.shape_cast %37 : vector<128x128xf32> to vector<1x128x128xf32>
    tpu.vector_store %arg3[%c0_51, %c0_52, %c0_53], %40 {strides = array<i32>} : memref<1x128x128xf32, #tpu.memory_space<vmem>>, vector<1x128x128xf32>,
    %c0_54 = arith.constant 0 : index
    %c0_55 = arith.constant 0 : index
    %c0_56 = arith.constant 0 : index
    %41 = vector.load %arg3[%c0_54, %c0_55, %c0_56] : memref<1x128x128xf32, #tpu.memory_space<vmem>>, vector<1x1x128xf32>
    %42 = vector.shape_cast %41 : vector<1x1x128xf32> to vector<1x128xf32>
    %c0_i32_57 = arith.constant 0 : i32
    %c16_i32_58 = arith.constant 16 : i32
    %43 = arith.addi %c0_i32_57, %c16_i32_58 : i32
    %c1_i32_59 = arith.constant 1 : i32
    %44 = scf.for %arg6 = %c0_i32_57 to %43 step %c1_i32_59 iter_args(%arg7 = %42) -> (vector<1x128xf32>)  : i32 {
      %c8_i32 = arith.constant 8 : i32
      %48 = arith.muli %arg6, %c8_i32 : i32
      %49 = tpu.assume_multiple %48, 8 : i32
      %c0_66 = arith.constant 0 : index
      %50 = arith.index_cast %49 : i32 to index
      %c0_67 = arith.constant 0 : index
      %51 = vector.load %arg3[%c0_66, %50, %c0_67] : memref<1x128x128xf32, #tpu.memory_space<vmem>>, vector<1x8x128xf32>
      %52 = vector.shape_cast %51 : vector<1x8x128xf32> to vector<8x128xf32>
      %c0_68 = arith.constant 0 : index
      %53 = arith.index_cast %49 : i32 to index
      %c0_69 = arith.constant 0 : index
      %54 = vector.load %arg2[%c0_68, %53, %c0_69] : memref<1x128x128xf32, #tpu.memory_space<vmem>>, vector<1x8x128xf32>
      %55 = vector.shape_cast %54 : vector<1x8x128xf32> to vector<8x128xf32>
      %cst_70 = arith.constant -0.0527046286 : f32
      %56 = vector.broadcast %cst_70 : f32 to vector<8x128xf32>
      %57 = arith.mulf %56, %55 : vector<8x128xf32>
      %58 = math.exp %57 : vector<8x128xf32>
      %59 = vector.extract_strided_slice %52 {offsets = [0, 0], sizes = [1, 128], strides = [1, 1]} : vector<8x128xf32> to vector<1x128xf32>
      %60 = vector.extract_strided_slice %58 {offsets = [0, 0], sizes = [1, 128], strides = [1, 1]} : vector<8x128xf32> to vector<1x128xf32>
      %61 = arith.subf %arg7, %59 : vector<1x128xf32>
      %62 = arith.mulf %60, %61 : vector<1x128xf32>
      %63 = arith.addf %59, %62 : vector<1x128xf32>
      %64 = vector.extract_strided_slice %52 {offsets = [1, 0], sizes = [1, 128], strides = [1, 1]} : vector<8x128xf32> to vector<1x128xf32>
      %65 = vector.extract_strided_slice %58 {offsets = [1, 0], sizes = [1, 128], strides = [1, 1]} : vector<8x128xf32> to vector<1x128xf32>
      %66 = arith.subf %63, %64 : vector<1x128xf32>
      %67 = arith.mulf %65, %66 : vector<1x128xf32>
      %68 = arith.addf %64, %67 : vector<1x128xf32>
      %69 = vector.extract_strided_slice %52 {offsets = [2, 0], sizes = [1, 128], strides = [1, 1]} : vector<8x128xf32> to vector<1x128xf32>
      %70 = vector.extract_strided_slice %58 {offsets = [2, 0], sizes = [1, 128], strides = [1, 1]} : vector<8x128xf32> to vector<1x128xf32>
      %71 = arith.subf %68, %69 : vector<1x128xf32>
      %72 = arith.mulf %70, %71 : vector<1x128xf32>
      %73 = arith.addf %69, %72 : vector<1x128xf32>
      %74 = vector.extract_strided_slice %52 {offsets = [3, 0], sizes = [1, 128], strides = [1, 1]} : vector<8x128xf32> to vector<1x128xf32>
      %75 = vector.extract_strided_slice %58 {offsets = [3, 0], sizes = [1, 128], strides = [1, 1]} : vector<8x128xf32> to vector<1x128xf32>
      %76 = arith.subf %73, %74 : vector<1x128xf32>
      %77 = arith.mulf %75, %76 : vector<1x128xf32>
      %78 = arith.addf %74, %77 : vector<1x128xf32>
      %79 = vector.extract_strided_slice %52 {offsets = [4, 0], sizes = [1, 128], strides = [1, 1]} : vector<8x128xf32> to vector<1x128xf32>
      %80 = vector.extract_strided_slice %58 {offsets = [4, 0], sizes = [1, 128], strides = [1, 1]} : vector<8x128xf32> to vector<1x128xf32>
      %81 = arith.subf %78, %79 : vector<1x128xf32>
      %82 = arith.mulf %80, %81 : vector<1x128xf32>
      %83 = arith.addf %79, %82 : vector<1x128xf32>
      %84 = vector.extract_strided_slice %52 {offsets = [5, 0], sizes = [1, 128], strides = [1, 1]} : vector<8x128xf32> to vector<1x128xf32>
      %85 = vector.extract_strided_slice %58 {offsets = [5, 0], sizes = [1, 128], strides = [1, 1]} : vector<8x128xf32> to vector<1x128xf32>
      %86 = arith.subf %83, %84 : vector<1x128xf32>
      %87 = arith.mulf %85, %86 : vector<1x128xf32>
      %88 = arith.addf %84, %87 : vector<1x128xf32>
      %89 = vector.extract_strided_slice %52 {offsets = [6, 0], sizes = [1, 128], strides = [1, 1]} : vector<8x128xf32> to vector<1x128xf32>
      %90 = vector.extract_strided_slice %58 {offsets = [6, 0], sizes = [1, 128], strides = [1, 1]} : vector<8x128xf32> to vector<1x128xf32>
      %91 = arith.subf %88, %89 : vector<1x128xf32>
      %92 = arith.mulf %90, %91 : vector<1x128xf32>
      %93 = arith.addf %89, %92 : vector<1x128xf32>
      %94 = vector.extract_strided_slice %52 {offsets = [7, 0], sizes = [1, 128], strides = [1, 1]} : vector<8x128xf32> to vector<1x128xf32>
      %95 = vector.extract_strided_slice %58 {offsets = [7, 0], sizes = [1, 128], strides = [1, 1]} : vector<8x128xf32> to vector<1x128xf32>
      %96 = arith.subf %93, %94 : vector<1x128xf32>
      %97 = arith.mulf %95, %96 : vector<1x128xf32>
      %98 = arith.addf %94, %97 : vector<1x128xf32>
      %99 = tpu.concatenate %63, %68, %73, %78, %83, %88, %93, %98 in 0 : vector<1x128xf32>, vector<1x128xf32>, vector<1x128xf32>, vector<1x128xf32>, vector<1x128xf32>, vector<1x128xf32>, vector<1x128xf32>, vector<1x128xf32> -> vector<8x128xf32>
      %c0_71 = arith.constant 0 : index
      %100 = arith.index_cast %49 : i32 to index
      %c0_72 = arith.constant 0 : index
      %101 = vector.load %arg3[%c0_71, %100, %c0_72] : memref<1x128x128xf32, #tpu.memory_space<vmem>>, vector<1x8x128xf32>
      %102 = vector.shape_cast %101 : vector<1x8x128xf32> to vector<8x128xf32>
      %103 = vector.shape_cast %99 : vector<8x128xf32> to vector<1x8x128xf32>
      tpu.vector_store %arg3[%c0_71, %100, %c0_72], %103 {strides = array<i32>} : memref<1x128x128xf32, #tpu.memory_space<vmem>>, vector<1x8x128xf32>,
      scf.yield %98 : vector<1x128xf32>
    }
    %c16_i32_60 = arith.constant 16 : i32
    %cst_61 = arith.constant 0.000000e+00 : f32
    %45 = vector.broadcast %cst_61 : f32 to vector<1x128xf32>
    %c0_i32_62 = arith.constant 0 : i32
    %c16_i32_63 = arith.constant 16 : i32
    %46 = arith.addi %c0_i32_62, %c16_i32_63 : i32
    %c1_i32_64 = arith.constant 1 : i32
    %47:2 = scf.for %arg6 = %c0_i32_62 to %46 step %c1_i32_64 iter_args(%arg7 = %45, %arg8 = %45) -> (vector<1x128xf32>, vector<1x128xf32>)  : i32 {
      %c15_i32 = arith.constant 15 : i32
      %48 = arith.subi %c15_i32, %arg6 : i32
      %c8_i32 = arith.constant 8 : i32
      %49 = arith.muli %48, %c8_i32 : i32
      %50 = tpu.assume_multiple %49, 8 : i32
      %c0_66 = arith.constant 0 : index
      %51 = arith.index_cast %50 : i32 to index
      %c0_67 = arith.constant 0 : index
      %52 = vector.load %arg3[%c0_66, %51, %c0_67] : memref<1x128x128xf32, #tpu.memory_space<vmem>>, vector<1x8x128xf32>
      %53 = vector.shape_cast %52 : vector<1x8x128xf32> to vector<8x128xf32>
      %c0_68 = arith.constant 0 : index
      %54 = arith.index_cast %50 : i32 to index
      %c0_69 = arith.constant 0 : index
      %55 = vector.load %arg2[%c0_68, %54, %c0_69] : memref<1x128x128xf32, #tpu.memory_space<vmem>>, vector<1x8x128xf32>
      %56 = vector.shape_cast %55 : vector<1x8x128xf32> to vector<8x128xf32>
      %cst_70 = arith.constant -0.0527046286 : f32
      %57 = vector.broadcast %cst_70 : f32 to vector<8x128xf32>
      %58 = arith.mulf %57, %56 : vector<8x128xf32>
      %59 = math.exp %58 : vector<8x128xf32>
      %60 = vector.extract_strided_slice %53 {offsets = [7, 0], sizes = [1, 128], strides = [1, 1]} : vector<8x128xf32> to vector<1x128xf32>
      %61 = arith.subf %arg7, %60 : vector<1x128xf32>
      %62 = arith.mulf %arg8, %61 : vector<1x128xf32>
      %63 = arith.addf %60, %62 : vector<1x128xf32>
      %64 = vector.extract_strided_slice %59 {offsets = [7, 0], sizes = [1, 128], strides = [1, 1]} : vector<8x128xf32> to vector<1x128xf32>
      %65 = vector.extract_strided_slice %53 {offsets = [6, 0], sizes = [1, 128], strides = [1, 1]} : vector<8x128xf32> to vector<1x128xf32>
      %66 = arith.subf %63, %65 : vector<1x128xf32>
      %67 = arith.mulf %64, %66 : vector<1x128xf32>
      %68 = arith.addf %65, %67 : vector<1x128xf32>
      %69 = vector.extract_strided_slice %59 {offsets = [6, 0], sizes = [1, 128], strides = [1, 1]} : vector<8x128xf32> to vector<1x128xf32>
      %70 = vector.extract_strided_slice %53 {offsets = [5, 0], sizes = [1, 128], strides = [1, 1]} : vector<8x128xf32> to vector<1x128xf32>
      %71 = arith.subf %68, %70 : vector<1x128xf32>
      %72 = arith.mulf %69, %71 : vector<1x128xf32>
      %73 = arith.addf %70, %72 : vector<1x128xf32>
      %74 = vector.extract_strided_slice %59 {offsets = [5, 0], sizes = [1, 128], strides = [1, 1]} : vector<8x128xf32> to vector<1x128xf32>
      %75 = vector.extract_strided_slice %53 {offsets = [4, 0], sizes = [1, 128], strides = [1, 1]} : vector<8x128xf32> to vector<1x128xf32>
      %76 = arith.subf %73, %75 : vector<1x128xf32>
      %77 = arith.mulf %74, %76 : vector<1x128xf32>
      %78 = arith.addf %75, %77 : vector<1x128xf32>
      %79 = vector.extract_strided_slice %59 {offsets = [4, 0], sizes = [1, 128], strides = [1, 1]} : vector<8x128xf32> to vector<1x128xf32>
      %80 = vector.extract_strided_slice %53 {offsets = [3, 0], sizes = [1, 128], strides = [1, 1]} : vector<8x128xf32> to vector<1x128xf32>
      %81 = arith.subf %78, %80 : vector<1x128xf32>
      %82 = arith.mulf %79, %81 : vector<1x128xf32>
      %83 = arith.addf %80, %82 : vector<1x128xf32>
      %84 = vector.extract_strided_slice %59 {offsets = [3, 0], sizes = [1, 128], strides = [1, 1]} : vector<8x128xf32> to vector<1x128xf32>
      %85 = vector.extract_strided_slice %53 {offsets = [2, 0], sizes = [1, 128], strides = [1, 1]} : vector<8x128xf32> to vector<1x128xf32>
      %86 = arith.subf %83, %85 : vector<1x128xf32>
      %87 = arith.mulf %84, %86 : vector<1x128xf32>
      %88 = arith.addf %85, %87 : vector<1x128xf32>
      %89 = vector.extract_strided_slice %59 {offsets = [2, 0], sizes = [1, 128], strides = [1, 1]} : vector<8x128xf32> to vector<1x128xf32>
      %90 = vector.extract_strided_slice %53 {offsets = [1, 0], sizes = [1, 128], strides = [1, 1]} : vector<8x128xf32> to vector<1x128xf32>
      %91 = arith.subf %88, %90 : vector<1x128xf32>
      %92 = arith.mulf %89, %91 : vector<1x128xf32>
      %93 = arith.addf %90, %92 : vector<1x128xf32>
      %94 = vector.extract_strided_slice %59 {offsets = [1, 0], sizes = [1, 128], strides = [1, 1]} : vector<8x128xf32> to vector<1x128xf32>
      %95 = vector.extract_strided_slice %53 {offsets = [0, 0], sizes = [1, 128], strides = [1, 1]} : vector<8x128xf32> to vector<1x128xf32>
      %96 = arith.subf %93, %95 : vector<1x128xf32>
      %97 = arith.mulf %94, %96 : vector<1x128xf32>
      %98 = arith.addf %95, %97 : vector<1x128xf32>
      %99 = vector.extract_strided_slice %59 {offsets = [0, 0], sizes = [1, 128], strides = [1, 1]} : vector<8x128xf32> to vector<1x128xf32>
      %100 = tpu.concatenate %98, %93, %88, %83, %78, %73, %68, %63 in 0 : vector<1x128xf32>, vector<1x128xf32>, vector<1x128xf32>, vector<1x128xf32>, vector<1x128xf32>, vector<1x128xf32>, vector<1x128xf32>, vector<1x128xf32> -> vector<8x128xf32>
      %c0_71 = arith.constant 0 : index
      %101 = arith.index_cast %50 : i32 to index
      %c0_72 = arith.constant 0 : index
      %102 = vector.load %arg3[%c0_71, %101, %c0_72] : memref<1x128x128xf32, #tpu.memory_space<vmem>>, vector<1x8x128xf32>
      %103 = vector.shape_cast %102 : vector<1x8x128xf32> to vector<8x128xf32>
      %104 = vector.shape_cast %100 : vector<8x128xf32> to vector<1x8x128xf32>
      tpu.vector_store %arg3[%c0_71, %101, %c0_72], %104 {strides = array<i32>} : memref<1x128x128xf32, #tpu.memory_space<vmem>>, vector<1x8x128xf32>,
      scf.yield %98, %99 : vector<1x128xf32>, vector<1x128xf32>
    }
    %c16_i32_65 = arith.constant 16 : i32
    return
  }
  func.func @transform_0(%arg0: i32) -> (i32, i32, i32) {
    %c0_i32 = arith.constant 0 : i32
    %c0_i32_0 = arith.constant 0 : i32
    %c0_i32_1 = arith.constant 0 : i32
    return %arg0, %c0_i32, %c0_i32_0 : i32, i32, i32
  }
  func.func @transform_1(%arg0: i32) -> (i32, i32, i32) {
    %c0_i32 = arith.constant 0 : i32
    %c0_i32_0 = arith.constant 0 : i32
    %c0_i32_1 = arith.constant 0 : i32
    return %arg0, %c0_i32, %c0_i32_0 : i32, i32, i32
  }
  func.func @transform_2(%arg0: i32) -> (i32, i32, i32) {
    %c0_i32 = arith.constant 0 : i32
    %c0_i32_0 = arith.constant 0 : i32
    %c0_i32_1 = arith.constant 0 : i32
    return %arg0, %c0_i32, %c0_i32_0 : i32, i32, i32
  }
}

</mosaic_0001>

<bundles_post_ra>
// kernel: tpu_custom_call.1
= control target key start
LH: loop header
LB: loop body
LE: loop exit
PB: predicated region body
PF: predicated region fallthrough
CT: control target
= control target key end

     0   :  { %7 = vsyncpa [#allocation5], 0  ;;  %s2510_s0 = inlined_call_operand.hbm [shape: f32[8,128,128], index: 0, kind: input, shape index: {}]   ;;  %s2511_s1 = inlined_call_operand.hbm [shape: f32[8,128,128], index: 1, kind: input, shape index: {}]   ;;  %s2512_s2 = inlined_call_operand.hbm [shape: f32[8,128,128], index: 2, kind: output, shape index: {}]  }
   0x1   :  { %9 = vsyncpa [#allocation5 + $0x1], 0 }
   0x2   :  { %10 = vsyncpa [#allocation8], 0 }
   0x3   :  { %12 = vsyncpa [#allocation8 + $0x1], 0 }
   0x4   :  { %13 = vsyncpa [#allocation6], 0 }
   0x5   :  { %15 = vsyncpa [#allocation6 + $0x1], 0  ;;  %s1974_s9 = smov 0   ;;  %s1976_s10 = smov 0  }
   0x6   :  { %s1978_s11 = smov 0   ;;  %s1980_s12 = smov 0  }
   0x7 LB: > { %s1995_s13 = sadd.s32 4294967295, %s1870_s12   ;;  %s1400_s14 = sadd.s32 4294967294, %s1870_s12   ;;  %s1870_s12 = sphi %s1980_s12, %s2527_s12   ;;  %s1866_s11 = sphi %s1978_s11, %s2526_s11   ;;  %s1862_s10 = sphi %s1976_s10, %s2525_s10   ;;  %s1858_s9 = sphi %s1974_s9, %s2524_s9  }
   0x8   : > { %s1999_s15 = sadd.s32 1, %s1870_s12   ;;  %s28_s16 = sadd.s32 1, %s1866_s11 }
   0x9   : > { %s25_s17 = ssub.s32 %s1870_s12, %s1999_s15  ;;  %p35_p0 = scmp.ne.s32.totalorder %s1866_s11, %s1862_s10 }
   0xa   : > { %p26_p1 = scmp.eq.s32.totalorder %s25_s17, 0  ;;  %p36_p2 = scmp.eq.s32.totalorder %s1870_s12, 0 }
   0xb   : > { %p41_p3 = scmp.ne.s32.totalorder %s1862_s10, %s1858_s9  ;;  %p42_p4 = scmp.eq.s32.totalorder %s1995_s13, 0 }
   0xc   : > { %s2011_s18 = scalar_select %p26_p1, %s1866_s11, %s28_s16  }
   0xd   : > { %p2013_p5 = por %p36_p2, %p35_p0  ;;  %p2017_p6 = por %p42_p4, %p41_p3 }
   0xe   : > { %p91_p7 = scmp.eq.s32.totalorder %s1995_s13, 7  ;;  %p97_p8 = scmp.eq.s32.totalorder %s1400_s14, 7 }
   0xf   : > { %s2516_s20 = scalar_select %p2017_p6, 1, 0 }
  0x10   : > { %p1446_p9 = scmp.lt.s32.totalorder %s1870_s12, 8  ;;  %p2023_p10 = por %p91_p7, %p35_p0 }
  0x11   : > { %p2027_p11 = por %p97_p8, %p41_p3  ;;  %s2032_s23 = sand.u32 1, %s1866_s11  }
  0x12   : > { %s2517_s21 = scalar_select %p2023_p10, 1, 0 }
  0x13   : > { %s2518_s22 = scalar_select %p2027_p11, 1, 0 }
  0x14   : > { %s1426_s24 = sshll.u32 %s1870_s12, 11  ;;  %s1403_s25 = sshll.u32 %s2032_s23, 7 }
  0x15   : > { %s2041_s28 = scalar_lea.hbm %s2510_s0, %s1426_s24  ;;  %s121_s29 = scalar_lea.vmem [#allocation4], %s1403_s25 }
  0x16   : > { %s128_s30 = sshll.u32 %s121_s29, 4  ;;  %p2047_p12 = pnand %p1446_p9, %p2013_p5  ;;  %s2051_s30 = int_to_ptr.vmem [resolvable:$true] %s128_s30 }
  0x17   : > { %s118_s4 = scalar_lea.sflag [#allocation5], %s2032_s23  ;;  %s1660_s5 = scalar_lea.hbm %s2041_s28, 2048 }
  0x18   : > { %p1661_p13 = scmp.ne.s32.totalorder %s2041_s28, %s1660_s5  ;;  %p1662_p0 = pneg %p2047_p12 }
  0x19   : > { %s1665_s8 = scalar_lea.hbm %s2510_s0, 16384  ;;  %p1666_p3 = scmp.lt.u32.totalorder %s2041_s28, %s2510_s0 }
  0x1a   : > { %p1663_p1 = pnand %p1662_p0, %p1661_p13  ;;  %p1667_p4 = scmp.lt.u32.totalorder %s1665_s8, %s1660_s5 }
  0x1b   : > { %p1669_p7 = scmp.lt.u32.totalorder %s1660_s5, %s2041_s28 }
  0x1c   : > { %p1664_p2 = pneg %p1663_p1  ;;  %p1668_p5 = por %p1667_p4, %p1666_p3 }
  0x1e   : > { %p1670_p8 = por %p1669_p7, %p1668_p5 }
  0x20   : > { %p1671_p9 = pnand %p1670_p8, %p1664_p2 }
  0x22   : > { %1674 = shalt.err (!%p1671_p9)
}
  0x23   : > { %s1675_s17 = scalar_lea.vmem %s2051_s30, 2048  ;;  %s1952_s19 = smov [#allocation4]  }
  0x24   : > { %p1676_p13 = scmp.ne.s32.totalorder %s2051_s30, %s1675_s17  ;;  %s1680_s26 = sshll.u32 %s1952_s19, 4  ;;  %s1681_s26 = int_to_ptr.vmem [resolvable:$false] %s1680_s26 }
  0x25   : > { %s1682_s27 = scalar_lea.vmem %s1681_s26, 4096  ;;  %p1683_p10 = scmp.lt.s32.totalorder %s2051_s30, %s1681_s26 }
  0x26   : > { %p1678_p1 = pnand %p1676_p13, %p1662_p0  ;;  %p1684_p3 = scmp.lt.s32.totalorder %s1682_s27, %s1675_s17 }
  0x28   : > { %p1679_p11 = pneg %p1678_p1  ;;  %p1685_p4 = por %p1684_p3, %p1683_p10 }
  0x2a   : > { %p1686_p5 = pnand %p1685_p4, %p1679_p11 }
  0x2c   : > { %1689 = shalt.err (!%p1686_p5)
}
  0x2d   : > { %s1953_s29 = smov 128   ;;  %s1954_s5 = smov 8  }
  0x2e   : > { %1438 = dma.hbm_to_vmem [thread:$0]  (!%p2047_p12), %s2041_s28, 2048, %s2051_s30, %s118_s4, %s1953_s29, %s1953_s29, %s1954_s5  }
  0x2f   : > { %p1409_p10 = scmp.ge.s32.totalorder %s1870_s12, 1  ;;  %p157_p11 = scmp.lt.s32.totalorder %s1870_s12, 9 }
  0x30   : > { %s2095_s14 = scalar_lea.hbm %s2511_s1, %s1426_s24  ;;  %s142_s16 = scalar_lea.vmem [#allocation7], %s1403_s25 }
  0x31   : > { %p2086_p2 = pnand %p1409_p10, %p157_p11  ;;  %s149_s17 = sshll.u32 %s142_s16, 4  ;;  %s2099_s17 = int_to_ptr.vmem [resolvable:$true] %s149_s17 }
  0x32   : > { %s139_s28 = scalar_lea.sflag [#allocation8], %s2032_s23  ;;  %s1690_s30 = scalar_lea.hbm %s2095_s14, 2048 }
  0x33   : > { %p1691_p7 = scmp.ne.s32.totalorder %s2095_s14, %s1690_s30  ;;  %s1695_s24 = scalar_lea.hbm %s2511_s1, 16384 }
  0x34   : > { %p1696_p13 = scmp.lt.u32.totalorder %s2095_s14, %s2511_s1  ;;  %p1697_p1 = scmp.lt.u32.totalorder %s1695_s24, %s1690_s30 }
  0x35   : > { %p1693_p8 = pnand %p1691_p7, %p1662_p0  ;;  %p1699_p4 = scmp.lt.u32.totalorder %s1690_s30, %s2095_s14 }
  0x36   : > { %p1698_p3 = por %p1697_p1, %p1696_p13 }
  0x37   : > { %p1694_p9 = pneg %p1693_p8 }
  0x38   : > { %p1700_p5 = por %p1699_p4, %p1698_p3 }
  0x3a   : > { %p1701_p10 = pnand %p1700_p5, %p1694_p9 }
  0x3c   : > { %1704 = shalt.err (!%p1701_p10)
}
  0x3d   : > { %s1705_s25 = scalar_lea.vmem %s2099_s17, 2048  ;;  %s1955_s7 = smov [#allocation7]  }
  0x3e   : > { %p1706_p11 = scmp.ne.s32.totalorder %s2099_s17, %s1705_s25  ;;  %s1710_s8 = sshll.u32 %s1955_s7, 4  ;;  %s1711_s8 = int_to_ptr.vmem [resolvable:$false] %s1710_s8 }
  0x3f   : > { %s1712_s16 = scalar_lea.vmem %s1711_s8, 4096  ;;  %p1713_p6 = scmp.lt.s32.totalorder %s2099_s17, %s1711_s8 }
  0x40   : > { %p1708_p7 = pnand %p1706_p11, %p1662_p0  ;;  %p1714_p13 = scmp.lt.s32.totalorder %s1712_s16, %s1705_s25 }
  0x42   : > { %p1709_p8 = pneg %p1708_p7  ;;  %p1715_p1 = por %p1714_p13, %p1713_p6 }
  0x44   : > { %p1716_p3 = pnand %p1715_p1, %p1709_p8 }
  0x46   : > { %1719 = shalt.err (!%p1716_p3)
}
  0x47   : > { %1441 = dma.hbm_to_vmem [thread:$0]  (!%p2047_p12), %s2095_s14, 2048, %s2099_s17, %s139_s28, %s1953_s29, %s1953_s29, %s1954_s5  }
  0x48   : > { %161 = sbr.rel (%p2086_p2) target bundleno = 1527 (0x5f7), region = 28  ;;  %s2133_s30 = sand.u32 (!%p2086_p2), 1, %s1862_s10  }
  0x49   : > { %s2136_s4 = sshll.u32 (!%p2086_p2), %s2133_s30, 7  ;;  %s164_s3 = scalar_lea.sflag (!%p2086_p2), [#allocation5], %s2133_s30 }
  0x4a   : > { %s2140_s19 = scalar_lea.vmem (!%p2086_p2), [#allocation4], %s2136_s4  ;;  %p2521_p6 = scmp.ne.s32.totalorder (!%p2086_p2), %s2516_s20, 0 }
  0x4f   : > { %1845 = dma.done.wait (%p2521_p6), %s164_s3, 2048  }
  0x50   : > { %1847 = vsyncadd (%p2521_p6), %s164_s3, 4294965248  ;;  %s173_s23 = scalar_lea.sflag [#allocation8], %s2133_s30  ;;  %s2148_s29 = scalar_lea.vmem [#allocation7], %s2136_s4 }
  0x51   : > { %1849 = dma.done.wait (%p2521_p6), %s173_s23, 2048  }
  0x52   : > { %1851 = vsyncadd (%p2521_p6), %s173_s23, 4294965248  ;;  %v266_v0 = vld [vmem:[%s2140_s19] sm:$0xff]  ;;  %v267_v2 = vld [vmem:[%s2140_s19 + $0x8] sm:$0xff]  ;;  %s2187_s20 = scalar_lea.vmem [#allocation9], %s2136_s4  ;;  %s2191_s5 = smov 0  }
  0x53   : > { %v202_v1 = vld [vmem:[%s2148_s29] sm:$0xff]  ;;  %282 = vxpose.xlu1.b32.start [1/16] %v266_v0, 128  ;;  %v203_v3 = vld [vmem:[%s2148_s29 + $0x8] sm:$0xff]  ;;  %v268_v4 = vld [vmem:[%s2140_s19 + $0x10] sm:$0xff] }
  0x54   : > { %218 = vxpose.xlu0.b32.start [1/16] %v202_v1, 128  ;;  %v204_v5 = vld [vmem:[%s2148_s29 + $0x10] sm:$0xff]  ;;  %v269_v6 = vld [vmem:[%s2140_s19 + $0x18] sm:$0xff]  ;;  %v270_v8 = vld [vmem:[%s2140_s19 + $0x20] sm:$0xff] }
  0x55   : > { %v205_v7 = vld [vmem:[%s2148_s29 + $0x18] sm:$0xff]  ;;  %v206_v9 = vld [vmem:[%s2148_s29 + $0x20] sm:$0xff]  ;;  %v271_v10 = vld [vmem:[%s2140_s19 + $0x28] sm:$0xff] }
  0x56   : > { %v207_v11 = vld [vmem:[%s2148_s29 + $0x28] sm:$0xff]  ;;  %v272_v12 = vld [vmem:[%s2140_s19 + $0x30] sm:$0xff]  ;;  %v273_v14 = vld [vmem:[%s2140_s19 + $0x38] sm:$0xff] }
  0x57   : > { %283 = vxpose.xlu1.b32.cont [2/16] %v267_v2, 128  ;;  %v208_v13 = vld [vmem:[%s2148_s29 + $0x30] sm:$0xff]  ;;  %v209_v15 = vld [vmem:[%s2148_s29 + $0x38] sm:$0xff]  ;;  %v274_v16 = vld [vmem:[%s2140_s19 + $0x40] sm:$0xff] }
  0x58   : > { %219 = vxpose.xlu0.b32.cont [2/16] %v203_v3, 128  ;;  %v210_v17 = vld [vmem:[%s2148_s29 + $0x40] sm:$0xff]  ;;  %v275_v18 = vld [vmem:[%s2140_s19 + $0x48] sm:$0xff]  ;;  %v276_v20 = vld [vmem:[%s2140_s19 + $0x50] sm:$0xff] }
  0x59   : > { %v211_v19 = vld [vmem:[%s2148_s29 + $0x48] sm:$0xff]  ;;  %v212_v21 = vld [vmem:[%s2148_s29 + $0x50] sm:$0xff]  ;;  %v277_v22 = vld [vmem:[%s2140_s19 + $0x58] sm:$0xff] }
  0x5a   : > { %v213_v23 = vld [vmem:[%s2148_s29 + $0x58] sm:$0xff]  ;;  %v278_v24 = vld [vmem:[%s2140_s19 + $0x60] sm:$0xff]  ;;  %v279_v26 = vld [vmem:[%s2140_s19 + $0x68] sm:$0xff] }
  0x5b   : > { %284 = vxpose.xlu1.b32.cont [3/16] %v268_v4, 128  ;;  %v214_v25 = vld [vmem:[%s2148_s29 + $0x60] sm:$0xff]  ;;  %v215_v27 = vld [vmem:[%s2148_s29 + $0x68] sm:$0xff]  ;;  %v280_v28 = vld [vmem:[%s2140_s19 + $0x70] sm:$0xff] }
  0x5c   : > { %220 = vxpose.xlu0.b32.cont [3/16] %v204_v5, 128  ;;  %v216_v29 = vld [vmem:[%s2148_s29 + $0x70] sm:$0xff]  ;;  %v281_v30 = vld [vmem:[%s2140_s19 + $0x78] sm:$0xff] }
  0x5d   : > { %v217_v31 = vld [vmem:[%s2148_s29 + $0x78] sm:$0xff] }
  0x5f   : > { %285 = vxpose.xlu1.b32.cont [4/16] %v269_v6, 128 }
  0x60   : > { %221 = vxpose.xlu0.b32.cont [4/16] %v205_v7, 128 }
  0x63   : > { %286 = vxpose.xlu1.b32.cont [5/16] %v270_v8, 128 }
  0x64   : > { %222 = vxpose.xlu0.b32.cont [5/16] %v206_v9, 128 }
  0x67   : > { %287 = vxpose.xlu1.b32.cont [6/16] %v271_v10, 128 }
  0x68   : > { %223 = vxpose.xlu0.b32.cont [6/16] %v207_v11, 128 }
  0x6b   : > { %288 = vxpose.xlu1.b32.cont [7/16] %v272_v12, 128 }
  0x6c   : > { %224 = vxpose.xlu0.b32.cont [7/16] %v208_v13, 128 }
  0x6f   : > { %289 = vxpose.xlu1.b32.cont [8/16] %v273_v14, 128 }
  0x70   : > { %225 = vxpose.xlu0.b32.cont [8/16] %v209_v15, 128 }
  0x73   : > { %290 = vxpose.xlu1.b32.cont [9/16] %v274_v16, 128 }
  0x74   : > { %226 = vxpose.xlu0.b32.cont [9/16] %v210_v17, 128 }
  0x77   : > { %291 = vxpose.xlu1.b32.cont [10/16] %v275_v18, 128 }
  0x78   : > { %227 = vxpose.xlu0.b32.cont [10/16] %v211_v19, 128 }
  0x7b   : > { %292 = vxpose.xlu1.b32.cont [11/16] %v276_v20, 128 }
  0x7c   : > { %228 = vxpose.xlu0.b32.cont [11/16] %v212_v21, 128 }
  0x7f   : > { %293 = vxpose.xlu1.b32.cont [12/16] %v277_v22, 128 }
  0x80   : > { %229 = vxpose.xlu0.b32.cont [12/16] %v213_v23, 128 }
  0x83   : > { %294 = vxpose.xlu1.b32.cont [13/16] %v278_v24, 128 }
  0x84   : > { %230 = vxpose.xlu0.b32.cont [13/16] %v214_v25, 128 }
  0x87   : > { %295 = vxpose.xlu1.b32.cont [14/16] %v279_v26, 128 }
  0x88   : > { %231 = vxpose.xlu0.b32.cont [14/16] %v215_v27, 128 }
  0x8b   : > { %296 = vxpose.xlu1.b32.cont [15/16] %v280_v28, 128 }
  0x8c   : > { %232 = vxpose.xlu0.b32.cont [15/16] %v216_v29, 128 }
  0x8f   : > { %297 = vxpose.xlu1.b32.end [16/16] %v281_v30, 128 }
  0x90   : > { %233 = vxpose.xlu0.b32.end [16/16] %v217_v31, 128 }
  0xd3   : > { %v298_v32 = vpop.trf.xlu1 }
  0xd4   : > { %v234_v33 = vpop.trf.xlu0  ;;  %314 = vst [vmem:[#allocation2] sm:$0xff] %v298_v32 }
  0xd5   : > { %250 = vst [vmem:[#allocation3] sm:$0xff] %v234_v33 }
  0xd7   : > { %v299_v34 = vpop.trf.xlu1 }
  0xd8   : > { %v235_v35 = vpop.trf.xlu0  ;;  %315 = vst [vmem:[#allocation2 + $0x8] sm:$0xff] %v299_v34 }
  0xd9   : > { %251 = vst [vmem:[#allocation3 + $0x8] sm:$0xff] %v235_v35 }
  0xdb   : > { %v330_v36 = vld [vmem:[#allocation2] sm:$0x1]   ;;  %v300_v37 = vpop.trf.xlu1 }
  0xdc   : > { %v236_v38 = vpop.trf.xlu0  ;;  %316 = vst [vmem:[#allocation2 + $0x10] sm:$0xff] %v300_v37 }
  0xdd   : > { %252 = vst [vmem:[#allocation3 + $0x10] sm:$0xff] %v236_v38 }
  0xdf   : > { %v301_v39 = vpop.trf.xlu1 }
  0xe0   : > { %v237_v40 = vpop.trf.xlu0  ;;  %317 = vst [vmem:[#allocation2 + $0x18] sm:$0xff] %v301_v39 }
  0xe1   : > { %253 = vst [vmem:[#allocation3 + $0x18] sm:$0xff] %v237_v40 }
  0xe3   : > { %v302_v41 = vpop.trf.xlu1 }
  0xe4   : > { %v238_v42 = vpop.trf.xlu0  ;;  %318 = vst [vmem:[#allocation2 + $0x20] sm:$0xff] %v302_v41 }
  0xe5   : > { %254 = vst [vmem:[#allocation3 + $0x20] sm:$0xff] %v238_v42 }
  0xe7   : > { %v303_v43 = vpop.trf.xlu1 }
  0xe8   : > { %v239_v44 = vpop.trf.xlu0  ;;  %319 = vst [vmem:[#allocation2 + $0x28] sm:$0xff] %v303_v43 }
  0xe9   : > { %255 = vst [vmem:[#allocation3 + $0x28] sm:$0xff] %v239_v44 }
  0xeb   : > { %v304_v45 = vpop.trf.xlu1 }
  0xec   : > { %v240_v46 = vpop.trf.xlu0  ;;  %320 = vst [vmem:[#allocation2 + $0x30] sm:$0xff] %v304_v45 }
  0xed   : > { %256 = vst [vmem:[#allocation3 + $0x30] sm:$0xff] %v240_v46 }
  0xef   : > { %v305_v47 = vpop.trf.xlu1 }
  0xf0   : > { %v241_v48 = vpop.trf.xlu0  ;;  %321 = vst [vmem:[#allocation2 + $0x38] sm:$0xff] %v305_v47 }
  0xf1   : > { %257 = vst [vmem:[#allocation3 + $0x38] sm:$0xff] %v241_v48 }
  0xf3   : > { %v306_v49 = vpop.trf.xlu1 }
  0xf4   : > { %v242_v50 = vpop.trf.xlu0  ;;  %322 = vst [vmem:[#allocation2 + $0x40] sm:$0xff] %v306_v49 }
  0xf5   : > { %258 = vst [vmem:[#allocation3 + $0x40] sm:$0xff] %v242_v50 }
  0xf7   : > { %v307_v51 = vpop.trf.xlu1 }
  0xf8   : > { %v243_v52 = vpop.trf.xlu0  ;;  %323 = vst [vmem:[#allocation2 + $0x48] sm:$0xff] %v307_v51 }
  0xf9   : > { %259 = vst [vmem:[#allocation3 + $0x48] sm:$0xff] %v243_v52 }
  0xfb   : > { %v308_v53 = vpop.trf.xlu1 }
  0xfc   : > { %v244_v54 = vpop.trf.xlu0  ;;  %324 = vst [vmem:[#allocation2 + $0x50] sm:$0xff] %v308_v53 }
  0xfd   : > { %260 = vst [vmem:[#allocation3 + $0x50] sm:$0xff] %v244_v54 }
  0xff   : > { %v309_v55 = vpop.trf.xlu1 }
 0x100   : > { %v245_v56 = vpop.trf.xlu0  ;;  %325 = vst [vmem:[#allocation2 + $0x58] sm:$0xff] %v309_v55 }
 0x101   : > { %261 = vst [vmem:[#allocation3 + $0x58] sm:$0xff] %v245_v56 }
 0x103   : > { %v310_v57 = vpop.trf.xlu1 }
 0x104   : > { %v246_v58 = vpop.trf.xlu0  ;;  %326 = vst [vmem:[#allocation2 + $0x60] sm:$0xff] %v310_v57 }
 0x105   : > { %262 = vst [vmem:[#allocation3 + $0x60] sm:$0xff] %v246_v58 }
 0x107   : > { %v311_v59 = vpop.trf.xlu1 }
 0x108   : > { %v247_v60 = vpop.trf.xlu0  ;;  %327 = vst [vmem:[#allocation2 + $0x68] sm:$0xff] %v311_v59 }
 0x109   : > { %263 = vst [vmem:[#allocation3 + $0x68] sm:$0xff] %v247_v60 }
 0x10b   : > { %v312_v61 = vpop.trf.xlu1 }
 0x10c   : > { %v248_v62 = vpop.trf.xlu0  ;;  %328 = vst [vmem:[#allocation2 + $0x70] sm:$0xff] %v312_v61 }
 0x10d   : > { %264 = vst [vmem:[#allocation3 + $0x70] sm:$0xff] %v248_v62 }
 0x10f   : > { %v313_v63 = vpop.trf.xlu1 }
 0x110   : > { %v249_v0 = vpop.trf.xlu0  ;;  %329 = vst [vmem:[#allocation2 + $0x78] sm:$0xff] %v313_v63 }
 0x111   : > { %265 = vst [vmem:[#allocation3 + $0x78] sm:$0xff] %v249_v0 }
 0x112 LB: >> { %s1413_s6 = sshll.u32 %s1878_s5, 3  ;;  %vm394_vm0 = vcmask 1040384   ;;  %vm396_vm1 = vcmask 1041408   ;;  %vm398_vm2 = vcmask 1042432   ;;  %vm400_vm3 = vcmask 1043456   ;;  %s336_s5 = sadd.s32 1, %s1878_s5   ;;  %s1878_s5 = sphi %s2191_s5, %s336_s5   ;;  %v1874_v36 = vphi %v330_v36, %v410_v36  }
 0x113   : >> { %s341_s14 = scalar_lea.vmem [#allocation3], %s1413_s6  ;;  %s2198_s17 = scalar_lea.vmem [#allocation2], %s1413_s6  ;;  %vm402_vm4 = vcmask 1044480   ;;  %vm404_vm5 = vcmask 1045504   ;;  %vm406_vm6 = vcmask 1046528  }
 0x114   : >> { %p333_p12 = scmp.ge.s32.totalorder %s336_s5, 16  }
 0x115   : > { %v2214_v45 = vmov (%p333_p12), 0.0   ;;  %v2216_v46 = vmov (%p333_p12), 0.0   ;;  %s2218_s28 = smov (%p333_p12), 0  }
 0x117   : >> { %v340_v4 = vld [vmem:[%s2198_s17] sm:$0xff] }
 0x118   : >> { %v342_v1 = vld [vmem:[%s341_s14] sm:$0xff]  ;;  %v346_v5 = vsub.f32 %v1874_v36, %v340_v4  ;;  %v350_v8 = vrot.slane %v340_v4, 1 }
 0x119   : >> { %v343_v2 = vmul.f32 -0.026352314, %v342_v1 }
 0x11b   : >> { %v344_v3 = vmul.f32 1.442695, %v343_v2 }
 0x11d   : >> { %1644 = vpow2.f32 %v344_v3 }
 0x127   : >> { %v1645_v6 = vpop.eup %1644 }
 0x128   : >> { %v347_v7 = vmul.f32 %v1645_v6, %v346_v5 }
 0x12a   : >> { %v348_v9 = vadd.f32 %v347_v7, %v340_v4 }
 0x12c   : >> { %v352_v10 = vsub.f32 %v348_v9, %v350_v8 }
 0x12e   : >> { %v354_v11 = vrot.slane %v352_v10, 7 }
 0x130   : >> { %v356_v12 = vmul.f32 %v1645_v6, %v354_v11 }
 0x132   : >> { %v357_v13 = vadd.f32 %v356_v12, %v340_v4 }
 0x134   : >> { %v358_v14 = vsub.f32 %v357_v13, %v350_v8  ;;  %v395_v30 = vsel %vm394_vm0, %v348_v9, %v357_v13 }
 0x136   : >> { %v360_v15 = vrot.slane %v358_v14, 7 }
 0x138   : >> { %v362_v16 = vmul.f32 %v1645_v6, %v360_v15 }
 0x13a   : >> { %v363_v17 = vadd.f32 %v362_v16, %v340_v4 }
 0x13c   : >> { %v364_v18 = vsub.f32 %v363_v17, %v350_v8  ;;  %v397_v32 = vsel %vm396_vm1, %v395_v30, %v363_v17 }
 0x13e   : >> { %v366_v19 = vrot.slane %v364_v18, 7 }
 0x140   : >> { %v368_v20 = vmul.f32 %v1645_v6, %v366_v19 }
 0x142   : >> { %v369_v21 = vadd.f32 %v368_v20, %v340_v4 }
 0x144   : >> { %v370_v22 = vsub.f32 %v369_v21, %v350_v8  ;;  %v399_v35 = vsel %vm398_vm2, %v397_v32, %v369_v21 }
 0x146   : >> { %v372_v23 = vrot.slane %v370_v22, 7 }
 0x148   : >> { %v374_v24 = vmul.f32 %v1645_v6, %v372_v23 }
 0x14a   : >> { %v375_v25 = vadd.f32 %v374_v24, %v340_v4 }
 0x14c   : >> { %v376_v26 = vsub.f32 %v375_v25, %v350_v8  ;;  %v401_v37 = vsel %vm400_vm3, %v399_v35, %v375_v25 }
 0x14e   : >> { %v378_v27 = vrot.slane %v376_v26, 7 }
 0x150   : >> { %v380_v28 = vmul.f32 %v1645_v6, %v378_v27 }
 0x152   : >> { %v381_v29 = vadd.f32 %v380_v28, %v340_v4 }
 0x154   : >> { %v382_v31 = vsub.f32 %v381_v29, %v350_v8  ;;  %v403_v40 = vsel %vm402_vm4, %v401_v37, %v381_v29 }
 0x156   : >> { %v384_v33 = vrot.slane %v382_v31, 7 }
 0x158   : >> { %v386_v34 = vmul.f32 %v1645_v6, %v384_v33 }
 0x15a   : >> { %v387_v36 = vadd.f32 %v386_v34, %v340_v4 }
 0x15c   : >> { %v388_v38 = vsub.f32 %v387_v36, %v350_v8  ;;  %v405_v42 = vsel %vm404_vm5, %v403_v40, %v387_v36 }
 0x15e   : >> { %v390_v39 = vrot.slane %v388_v38, 7 }
 0x15f   : > { %335 = sbr.rel (!%p333_p12) target bundleno = 274 (0x112), region = 158 }
 0x160   : >> { %v392_v41 = vmul.f32 %v1645_v6, %v390_v39 }
 0x162   : >> { %v393_v43 = vadd.f32 %v392_v41, %v340_v4 }
 0x164   : >> { %v407_v44 = vsel %vm406_vm6, %v405_v42, %v393_v43  ;;  %v410_v36 = vrot.slane %v393_v43, 7  }
 0x165   : >> { %408 = vst [vmem:[%s2198_s17] sm:$0xff] %v407_v44 }
 0x166 LB: >> { %s420_s24 = ssub.s32 15, %s1890_s28  ;;  %s417_s28 = sadd.s32 1, %s1890_s28   ;;  %s1890_s28 = sphi %s2218_s28, %s417_s28   ;;  %v1886_v46 = vphi %v2216_v46, %v479_v46   ;;  %v1882_v45 = vphi %v2214_v45, %v1647_v45  }
 0x167   : >> { %s2226_s26 = sshll.u32 %s420_s24, 3  ;;  %p414_p0 = scmp.ge.s32.totalorder %s417_s28, 16  }
 0x168   : >> { %s422_s27 = scalar_lea.vmem [#allocation2], %s2226_s26  ;;  %s424_s25 = scalar_lea.vmem [#allocation3], %s2226_s26 }
 0x169   : >> { %v425_v48 = vld [vmem:[%s424_s25] sm:$0xff]  ;;  %s2265_s7 = smov (%p414_p0), 0  }
 0x16a   : >> { %v426_v49 = vmul.f32 -0.026352314, %v425_v48 }
 0x16c   : >> { %v423_v47 = vld [vmem:[%s422_s27] sm:$0xff]  ;;  %v427_v51 = vmul.f32 1.442695, %v426_v49 }
 0x16d   : >> { %v430_v50 = vrot.slane %v423_v47, 7 }
 0x16e   : >> { %1646 = vpow2.f32 %v427_v51 }
 0x16f   : >> { %v432_v52 = vsub.f32 %v1886_v46, %v430_v50 }
 0x171   : >> { %v433_v53 = vmul.f32 %v1882_v45, %v432_v52 }
 0x173   : >> { %v435_v54 = vrot.slane %v433_v53, 1 }
 0x175   : >> { %v437_v55 = vadd.f32 %v435_v54, %v423_v47 }
 0x177   : >> { %v438_v56 = vsub.f32 %v437_v55, %v430_v50 }
 0x178   : >> { %v1647_v45 = vpop.eup %1646  }
 0x179   : >> { %v439_v57 = vmul.f32 %v1647_v45, %v438_v56 }
 0x17b   : >> { %v441_v58 = vrot.slane %v439_v57, 1 }
 0x17d   : >> { %v443_v59 = vadd.f32 %v441_v58, %v423_v47 }
 0x17f   : >> { %v444_v60 = vsub.f32 %v443_v59, %v430_v50 }
 0x181   : >> { %v445_v61 = vmul.f32 %v1647_v45, %v444_v60 }
 0x183   : >> { %v447_v62 = vrot.slane %v445_v61, 1 }
 0x185   : >> { %v449_v63 = vadd.f32 %v447_v62, %v423_v47 }
 0x187   : >> { %v450_v0 = vsub.f32 %v449_v63, %v430_v50 }
 0x189   : >> { %v451_v1 = vmul.f32 %v1647_v45, %v450_v0 }
 0x18b   : >> { %v453_v2 = vrot.slane %v451_v1, 1 }
 0x18d   : >> { %v455_v3 = vadd.f32 %v453_v2, %v423_v47 }
 0x18f   : >> { %v456_v4 = vsub.f32 %v455_v3, %v430_v50 }
 0x191   : >> { %v457_v5 = vmul.f32 %v1647_v45, %v456_v4 }
 0x193   : >> { %v459_v6 = vrot.slane %v457_v5, 1 }
 0x195   : >> { %v461_v7 = vadd.f32 %v459_v6, %v423_v47 }
 0x197   : >> { %v462_v8 = vsub.f32 %v461_v7, %v430_v50 }
 0x199   : >> { %v463_v9 = vmul.f32 %v1647_v45, %v462_v8 }
 0x19b   : >> { %v465_v10 = vrot.slane %v463_v9, 1 }
 0x19d   : >> { %v467_v11 = vadd.f32 %v465_v10, %v423_v47 }
 0x19f   : >> { %v468_v12 = vsub.f32 %v467_v11, %v430_v50 }
 0x1a1   : >> { %v469_v13 = vmul.f32 %v1647_v45, %v468_v12 }
 0x1a3   : >> { %v471_v14 = vrot.slane %v469_v13, 1 }
 0x1a5   : >> { %v473_v15 = vadd.f32 %v471_v14, %v423_v47 }
 0x1a7   : >> { %v474_v16 = vsub.f32 %v473_v15, %v430_v50 }
 0x1a9   : >> { %v475_v17 = vmul.f32 %v1647_v45, %v474_v16 }
 0x1ab   : >> { %v477_v18 = vrot.slane %v475_v17, 1 }
 0x1ad   : >> { %v479_v46 = vadd.f32 %v477_v18, %v423_v47  }
 0x1af   : >> { %v481_v19 = vsel %vm394_vm0, %v479_v46, %v473_v15 }
 0x1b0   : >> { %v483_v20 = vsel %vm396_vm1, %v481_v19, %v467_v11  ;;  %416 = sbr.rel (!%p414_p0) target bundleno = 358 (0x166), region = 169 }
 0x1b1   : >> { %v485_v21 = vsel %vm398_vm2, %v483_v20, %v461_v7 }
 0x1b2   : >> { %v487_v22 = vsel %vm400_vm3, %v485_v21, %v455_v3 }
 0x1b3   : >> { %v489_v23 = vsel %vm402_vm4, %v487_v22, %v449_v63 }
 0x1b4   : >> { %v491_v24 = vsel %vm404_vm5, %v489_v23, %v443_v59 }
 0x1b5   : >> { %v493_v25 = vsel %vm406_vm6, %v491_v24, %v437_v55 }
 0x1b6   : >> { %494 = vst [vmem:[%s422_s27] sm:$0xff] %v493_v25 }
 0x1bd   : > { %v495_v26 = vld [vmem:[#allocation2] sm:$0xff]  ;;  %v496_v27 = vld [vmem:[#allocation2 + $0x8] sm:$0xff]  ;;  %v497_v28 = vld [vmem:[#allocation2 + $0x10] sm:$0xff] }
 0x1be   : > { %511 = vxpose.xlu0.b32.start [1/16] %v495_v26, 128  ;;  %v498_v29 = vld [vmem:[#allocation2 + $0x18] sm:$0xff]  ;;  %v499_v30 = vld [vmem:[#allocation2 + $0x20] sm:$0xff]  ;;  %v500_v31 = vld [vmem:[#allocation2 + $0x28] sm:$0xff] }
 0x1bf   : > { %v501_v32 = vld [vmem:[#allocation2 + $0x30] sm:$0xff]  ;;  %v502_v33 = vld [vmem:[#allocation2 + $0x38] sm:$0xff]  ;;  %v503_v34 = vld [vmem:[#allocation2 + $0x40] sm:$0xff] }
 0x1c0   : > { %v504_v35 = vld [vmem:[#allocation2 + $0x48] sm:$0xff]  ;;  %v505_v36 = vld [vmem:[#allocation2 + $0x50] sm:$0xff]  ;;  %v506_v37 = vld [vmem:[#allocation2 + $0x58] sm:$0xff] }
 0x1c1   : > { %v507_v38 = vld [vmem:[#allocation2 + $0x60] sm:$0xff]  ;;  %v508_v39 = vld [vmem:[#allocation2 + $0x68] sm:$0xff]  ;;  %v509_v40 = vld [vmem:[#allocation2 + $0x70] sm:$0xff] }
 0x1c2   : > { %512 = vxpose.xlu0.b32.cont [2/16] %v496_v27, 128  ;;  %v510_v41 = vld [vmem:[#allocation2 + $0x78] sm:$0xff] }
 0x1c6   : > { %513 = vxpose.xlu0.b32.cont [3/16] %v497_v28, 128 }
 0x1ca   : > { %514 = vxpose.xlu0.b32.cont [4/16] %v498_v29, 128 }
 0x1ce   : > { %515 = vxpose.xlu0.b32.cont [5/16] %v499_v30, 128 }
 0x1d2   : > { %516 = vxpose.xlu0.b32.cont [6/16] %v500_v31, 128 }
 0x1d6   : > { %517 = vxpose.xlu0.b32.cont [7/16] %v501_v32, 128 }
 0x1da   : > { %518 = vxpose.xlu0.b32.cont [8/16] %v502_v33, 128 }
 0x1de   : > { %519 = vxpose.xlu0.b32.cont [9/16] %v503_v34, 128 }
 0x1e2   : > { %520 = vxpose.xlu0.b32.cont [10/16] %v504_v35, 128 }
 0x1e6   : > { %521 = vxpose.xlu0.b32.cont [11/16] %v505_v36, 128 }
 0x1ea   : > { %522 = vxpose.xlu0.b32.cont [12/16] %v506_v37, 128 }
 0x1ee   : > { %523 = vxpose.xlu0.b32.cont [13/16] %v507_v38, 128 }
 0x1f2   : > { %524 = vxpose.xlu0.b32.cont [14/16] %v508_v39, 128 }
 0x1f6   : > { %525 = vxpose.xlu0.b32.cont [15/16] %v509_v40, 128 }
 0x1fa   : > { %526 = vxpose.xlu0.b32.end [16/16] %v510_v41, 128 }
 0x23e   : > { %v527_v42 = vpop.trf.xlu0 }
 0x23f   : > { %543 = vst [vmem:[%s2187_s20] sm:$0xff] %v527_v42 }
 0x242   : > { %v528_v43 = vpop.trf.xlu0 }
 0x243   : > { %544 = vst [vmem:[%s2187_s20 + $0x8] sm:$0xff] %v528_v43 }
 0x246   : > { %v559_v44 = vld [vmem:[%s2187_s20] sm:$0x1]   ;;  %v529_v45 = vpop.trf.xlu0 }
 0x247   : > { %545 = vst [vmem:[%s2187_s20 + $0x10] sm:$0xff] %v529_v45  ;;  %v1892_v59 = vmov %v559_v44  }
 0x24a   : > { %v530_v46 = vpop.trf.xlu0 }
 0x24b   : > { %546 = vst [vmem:[%s2187_s20 + $0x18] sm:$0xff] %v530_v46 }
 0x24e   : > { %v531_v47 = vpop.trf.xlu0 }
 0x24f   : > { %547 = vst [vmem:[%s2187_s20 + $0x20] sm:$0xff] %v531_v47 }
 0x252   : > { %v532_v48 = vpop.trf.xlu0 }
 0x253   : > { %548 = vst [vmem:[%s2187_s20 + $0x28] sm:$0xff] %v532_v48 }
 0x256   : > { %v533_v49 = vpop.trf.xlu0 }
 0x257   : > { %549 = vst [vmem:[%s2187_s20 + $0x30] sm:$0xff] %v533_v49 }
 0x25a   : > { %v534_v50 = vpop.trf.xlu0 }
 0x25b   : > { %550 = vst [vmem:[%s2187_s20 + $0x38] sm:$0xff] %v534_v50 }
 0x25e   : > { %v535_v51 = vpop.trf.xlu0 }
 0x25f   : > { %551 = vst [vmem:[%s2187_s20 + $0x40] sm:$0xff] %v535_v51 }
 0x262   : > { %v536_v52 = vpop.trf.xlu0 }
 0x263   : > { %552 = vst [vmem:[%s2187_s20 + $0x48] sm:$0xff] %v536_v52 }
 0x266   : > { %v537_v53 = vpop.trf.xlu0 }
 0x267   : > { %553 = vst [vmem:[%s2187_s20 + $0x50] sm:$0xff] %v537_v53 }
 0x26a   : > { %v538_v54 = vpop.trf.xlu0 }
 0x26b   : > { %554 = vst [vmem:[%s2187_s20 + $0x58] sm:$0xff] %v538_v54 }
 0x26e   : > { %v539_v55 = vpop.trf.xlu0 }
 0x26f   : > { %555 = vst [vmem:[%s2187_s20 + $0x60] sm:$0xff] %v539_v55 }
 0x272   : > { %v540_v56 = vpop.trf.xlu0 }
 0x273   : > { %556 = vst [vmem:[%s2187_s20 + $0x68] sm:$0xff] %v540_v56 }
 0x276   : > { %v541_v57 = vpop.trf.xlu0 }
 0x277   : > { %557 = vst [vmem:[%s2187_s20 + $0x70] sm:$0xff] %v541_v57 }
 0x27a   : > { %v542_v58 = vpop.trf.xlu0 }
 0x27b   : > { %558 = vst [vmem:[%s2187_s20 + $0x78] sm:$0xff] %v542_v58 }
 0x27c LB: >> { %s1415_s8 = sshll.u32 %s1898_s7, 3  ;;  %s565_s7 = sadd.s32 1, %s1898_s7   ;;  %s1898_s7 = sphi %s2265_s7, %s565_s7   ;;  %v1894_v59 = vphi %v1892_v59, %v639_v59  }
 0x27d   : >> { %s570_s16 = scalar_lea.vmem %s2148_s29, %s1415_s8 [#allocation7]  ;;  %s2273_s4 = scalar_lea.vmem %s2187_s20, %s1415_s8 [#allocation9] }
 0x27e   : >> { %v571_v60 = vld [vmem:[%s570_s16] sm:$0xff]  ;;  %p562_p2 = scmp.ge.s32.totalorder %s565_s7, 16  }
 0x27f   : >> { %v572_v61 = vmul.f32 -0.026352314, %v571_v60  ;;  %v2287_v40 = vmov (%p562_p2), 0.0   ;;  %v2289_v41 = vmov (%p562_p2), 0.0   ;;  %s2291_s3 = smov (%p562_p2), 0  }
 0x281   : >> { %v573_v62 = vmul.f32 1.442695, %v572_v61 }
 0x282   : >> { %v569_v63 = vld [vmem:[%s2273_s4] sm:$0xff] }
 0x283   : >> { %1648 = vpow2.f32 %v573_v62  ;;  %v575_v0 = vsub.f32 %v1894_v59, %v569_v63  ;;  %v579_v3 = vrot.slane %v569_v63, 1 }
 0x28d   : >> { %v1649_v1 = vpop.eup %1648 }
 0x28e   : >> { %v576_v2 = vmul.f32 %v1649_v1, %v575_v0 }
 0x290   : >> { %v577_v4 = vadd.f32 %v576_v2, %v569_v63 }
 0x292   : >> { %v581_v5 = vsub.f32 %v577_v4, %v579_v3 }
 0x294   : >> { %v583_v6 = vrot.slane %v581_v5, 7 }
 0x296   : >> { %v585_v7 = vmul.f32 %v1649_v1, %v583_v6 }
 0x298   : >> { %v586_v8 = vadd.f32 %v585_v7, %v569_v63 }
 0x29a   : >> { %v587_v9 = vsub.f32 %v586_v8, %v579_v3  ;;  %v624_v25 = vsel %vm394_vm0, %v577_v4, %v586_v8 }
 0x29c   : >> { %v589_v10 = vrot.slane %v587_v9, 7 }
 0x29e   : >> { %v591_v11 = vmul.f32 %v1649_v1, %v589_v10 }
 0x2a0   : >> { %v592_v12 = vadd.f32 %v591_v11, %v569_v63 }
 0x2a2   : >> { %v593_v13 = vsub.f32 %v592_v12, %v579_v3  ;;  %v626_v27 = vsel %vm396_vm1, %v624_v25, %v592_v12 }
 0x2a4   : >> { %v595_v14 = vrot.slane %v593_v13, 7 }
 0x2a6   : >> { %v597_v15 = vmul.f32 %v1649_v1, %v595_v14 }
 0x2a8   : >> { %v598_v16 = vadd.f32 %v597_v15, %v569_v63 }
 0x2aa   : >> { %v599_v17 = vsub.f32 %v598_v16, %v579_v3  ;;  %v628_v30 = vsel %vm398_vm2, %v626_v27, %v598_v16 }
 0x2ac   : >> { %v601_v18 = vrot.slane %v599_v17, 7 }
 0x2ae   : >> { %v603_v19 = vmul.f32 %v1649_v1, %v601_v18 }
 0x2b0   : >> { %v604_v20 = vadd.f32 %v603_v19, %v569_v63 }
 0x2b2   : >> { %v605_v21 = vsub.f32 %v604_v20, %v579_v3  ;;  %v630_v32 = vsel %vm400_vm3, %v628_v30, %v604_v20 }
 0x2b4   : >> { %v607_v22 = vrot.slane %v605_v21, 7 }
 0x2b6   : >> { %v609_v23 = vmul.f32 %v1649_v1, %v607_v22 }
 0x2b8   : >> { %v610_v24 = vadd.f32 %v609_v23, %v569_v63 }
 0x2ba   : >> { %v611_v26 = vsub.f32 %v610_v24, %v579_v3  ;;  %v632_v35 = vsel %vm402_vm4, %v630_v32, %v610_v24 }
 0x2bc   : >> { %v613_v28 = vrot.slane %v611_v26, 7 }
 0x2be   : >> { %v615_v29 = vmul.f32 %v1649_v1, %v613_v28 }
 0x2c0   : >> { %v616_v31 = vadd.f32 %v615_v29, %v569_v63 }
 0x2c2   : >> { %v617_v33 = vsub.f32 %v616_v31, %v579_v3  ;;  %v634_v37 = vsel %vm404_vm5, %v632_v35, %v616_v31 }
 0x2c4   : >> { %v619_v34 = vrot.slane %v617_v33, 7 }
 0x2c5   : > { %564 = sbr.rel (!%p562_p2) target bundleno = 636 (0x27c), region = 180 }
 0x2c6   : >> { %v621_v36 = vmul.f32 %v1649_v1, %v619_v34 }
 0x2c8   : >> { %v622_v38 = vadd.f32 %v621_v36, %v569_v63 }
 0x2ca   : >> { %v636_v39 = vsel %vm406_vm6, %v634_v37, %v622_v38  ;;  %v639_v59 = vrot.slane %v622_v38, 7  }
 0x2cb   : >> { %637 = vst [vmem:[%s2273_s4] sm:$0xff] %v636_v39 }
 0x2cc LB: >> { %s649_s19 = ssub.s32 15, %s1910_s3  ;;  %s646_s3 = sadd.s32 1, %s1910_s3   ;;  %s1910_s3 = sphi %s2291_s3, %s646_s3   ;;  %v1906_v41 = vphi %v2289_v41, %v708_v41   ;;  %v1902_v40 = vphi %v2287_v40, %v1651_v40  }
 0x2cd   : >> { %s1416_s23 = sshll.u32 %s649_s19, 3  ;;  %p643_p9 = scmp.ge.s32.totalorder %s646_s3, 16  }
 0x2ce   : >> { %s2300_s5 = scalar_lea.vmem %s2187_s20, %s1416_s23 [#allocation9]  ;;  %s653_s6 = scalar_lea.vmem %s2148_s29, %s1416_s23 [#allocation7] }
 0x2cf   : >> { %v654_v43 = vld [vmem:[%s653_s6] sm:$0xff]  ;;  %s2335_s14 = smov (%p643_p9), 0  }
 0x2d0   : >> { %v655_v44 = vmul.f32 -0.026352314, %v654_v43 }
 0x2d2   : >> { %v652_v42 = vld [vmem:[%s2300_s5] sm:$0xff]  ;;  %v656_v46 = vmul.f32 1.442695, %v655_v44 }
 0x2d3   : >> { %v659_v45 = vrot.slane %v652_v42, 7 }
 0x2d4   : >> { %1650 = vpow2.f32 %v656_v46 }
 0x2d5   : >> { %v661_v47 = vsub.f32 %v1906_v41, %v659_v45 }
 0x2d7   : >> { %v662_v48 = vmul.f32 %v1902_v40, %v661_v47 }
 0x2d9   : >> { %v664_v49 = vrot.slane %v662_v48, 1 }
 0x2db   : >> { %v666_v50 = vadd.f32 %v664_v49, %v652_v42 }
 0x2dd   : >> { %v667_v51 = vsub.f32 %v666_v50, %v659_v45 }
 0x2de   : >> { %v1651_v40 = vpop.eup %1650  }
 0x2df   : >> { %v668_v52 = vmul.f32 %v1651_v40, %v667_v51 }
 0x2e1   : >> { %v670_v53 = vrot.slane %v668_v52, 1 }
 0x2e3   : >> { %v672_v54 = vadd.f32 %v670_v53, %v652_v42 }
 0x2e5   : >> { %v673_v55 = vsub.f32 %v672_v54, %v659_v45 }
 0x2e7   : >> { %v674_v56 = vmul.f32 %v1651_v40, %v673_v55 }
 0x2e9   : >> { %v676_v57 = vrot.slane %v674_v56, 1 }
 0x2eb   : >> { %v678_v58 = vadd.f32 %v676_v57, %v652_v42 }
 0x2ed   : >> { %v679_v59 = vsub.f32 %v678_v58, %v659_v45 }
 0x2ef   : >> { %v680_v60 = vmul.f32 %v1651_v40, %v679_v59 }
 0x2f1   : >> { %v682_v61 = vrot.slane %v680_v60, 1 }
 0x2f3   : >> { %v684_v62 = vadd.f32 %v682_v61, %v652_v42 }
 0x2f5   : >> { %v685_v63 = vsub.f32 %v684_v62, %v659_v45 }
 0x2f7   : >> { %v686_v0 = vmul.f32 %v1651_v40, %v685_v63 }
 0x2f9   : >> { %v688_v1 = vrot.slane %v686_v0, 1 }
 0x2fb   : >> { %v690_v2 = vadd.f32 %v688_v1, %v652_v42 }
 0x2fd   : >> { %v691_v3 = vsub.f32 %v690_v2, %v659_v45 }
 0x2ff   : >> { %v692_v4 = vmul.f32 %v1651_v40, %v691_v3 }
 0x301   : >> { %v694_v5 = vrot.slane %v692_v4, 1 }
 0x303   : >> { %v696_v6 = vadd.f32 %v694_v5, %v652_v42 }
 0x305   : >> { %v697_v7 = vsub.f32 %v696_v6, %v659_v45 }
 0x307   : >> { %v698_v8 = vmul.f32 %v1651_v40, %v697_v7 }
 0x309   : >> { %v700_v9 = vrot.slane %v698_v8, 1 }
 0x30b   : >> { %v702_v10 = vadd.f32 %v700_v9, %v652_v42 }
 0x30d   : >> { %v703_v11 = vsub.f32 %v702_v10, %v659_v45 }
 0x30f   : >> { %v704_v12 = vmul.f32 %v1651_v40, %v703_v11 }
 0x311   : >> { %v706_v13 = vrot.slane %v704_v12, 1 }
 0x313   : >> { %v708_v41 = vadd.f32 %v706_v13, %v652_v42  }
 0x315   : >> { %v710_v14 = vsel %vm394_vm0, %v708_v41, %v702_v10 }
 0x316   : >> { %v712_v15 = vsel %vm396_vm1, %v710_v14, %v696_v6  ;;  %645 = sbr.rel (!%p643_p9) target bundleno = 716 (0x2cc), region = 191 }
 0x317   : >> { %v714_v16 = vsel %vm398_vm2, %v712_v15, %v690_v2 }
 0x318   : >> { %v716_v17 = vsel %vm400_vm3, %v714_v16, %v684_v62 }
 0x319   : >> { %v718_v18 = vsel %vm402_vm4, %v716_v17, %v678_v58 }
 0x31a   : >> { %v720_v19 = vsel %vm404_vm5, %v718_v18, %v672_v54 }
 0x31b   : >> { %v722_v20 = vsel %vm406_vm6, %v720_v19, %v666_v50 }
 0x31c   : >> { %723 = vst [vmem:[%s2300_s5] sm:$0xff] %v722_v20 }
 0x323   : > { %v724_v21 = vld [vmem:[%s2187_s20] sm:$0xff]  ;;  %v725_v22 = vld [vmem:[%s2187_s20 + $0x8] sm:$0xff]  ;;  %v726_v23 = vld [vmem:[%s2187_s20 + $0x10] sm:$0xff] }
 0x324   : > { %740 = vxpose.xlu0.b32.start [1/16] %v724_v21, 128  ;;  %v727_v24 = vld [vmem:[%s2187_s20 + $0x18] sm:$0xff]  ;;  %v728_v25 = vld [vmem:[%s2187_s20 + $0x20] sm:$0xff]  ;;  %v729_v26 = vld [vmem:[%s2187_s20 + $0x28] sm:$0xff] }
 0x325   : > { %v730_v27 = vld [vmem:[%s2187_s20 + $0x30] sm:$0xff]  ;;  %v731_v28 = vld [vmem:[%s2187_s20 + $0x38] sm:$0xff]  ;;  %v732_v29 = vld [vmem:[%s2187_s20 + $0x40] sm:$0xff] }
 0x326   : > { %v733_v30 = vld [vmem:[%s2187_s20 + $0x48] sm:$0xff]  ;;  %v734_v31 = vld [vmem:[%s2187_s20 + $0x50] sm:$0xff]  ;;  %v735_v32 = vld [vmem:[%s2187_s20 + $0x58] sm:$0xff] }
 0x327   : > { %v736_v33 = vld [vmem:[%s2187_s20 + $0x60] sm:$0xff]  ;;  %v737_v34 = vld [vmem:[%s2187_s20 + $0x68] sm:$0xff]  ;;  %v738_v35 = vld [vmem:[%s2187_s20 + $0x70] sm:$0xff] }
 0x328   : > { %741 = vxpose.xlu0.b32.cont [2/16] %v725_v22, 128  ;;  %v739_v36 = vld [vmem:[%s2187_s20 + $0x78] sm:$0xff] }
 0x32c   : > { %742 = vxpose.xlu0.b32.cont [3/16] %v726_v23, 128 }
 0x330   : > { %743 = vxpose.xlu0.b32.cont [4/16] %v727_v24, 128 }
 0x334   : > { %744 = vxpose.xlu0.b32.cont [5/16] %v728_v25, 128 }
 0x338   : > { %745 = vxpose.xlu0.b32.cont [6/16] %v729_v26, 128 }
 0x33c   : > { %746 = vxpose.xlu0.b32.cont [7/16] %v730_v27, 128 }
 0x340   : > { %747 = vxpose.xlu0.b32.cont [8/16] %v731_v28, 128 }
 0x344   : > { %748 = vxpose.xlu0.b32.cont [9/16] %v732_v29, 128 }
 0x348   : > { %749 = vxpose.xlu0.b32.cont [10/16] %v733_v30, 128 }
 0x34c   : > { %750 = vxpose.xlu0.b32.cont [11/16] %v734_v31, 128 }
 0x350   : > { %751 = vxpose.xlu0.b32.cont [12/16] %v735_v32, 128 }
 0x354   : > { %752 = vxpose.xlu0.b32.cont [13/16] %v736_v33, 128 }
 0x358   : > { %753 = vxpose.xlu0.b32.cont [14/16] %v737_v34, 128 }
 0x35c   : > { %754 = vxpose.xlu0.b32.cont [15/16] %v738_v35, 128 }
 0x360   : > { %755 = vxpose.xlu0.b32.end [16/16] %v739_v36, 128 }
 0x3a4   : > { %v756_v37 = vpop.trf.xlu0 }
 0x3a5   : > { %772 = vst [vmem:[#allocation2] sm:$0xff] %v756_v37 }
 0x3a8   : > { %v757_v38 = vpop.trf.xlu0 }
 0x3a9   : > { %773 = vst [vmem:[#allocation2 + $0x8] sm:$0xff] %v757_v38 }
 0x3ac   : > { %v788_v39 = vld [vmem:[#allocation2] sm:$0x1]   ;;  %v758_v40 = vpop.trf.xlu0 }
 0x3ad   : > { %774 = vst [vmem:[#allocation2 + $0x10] sm:$0xff] %v758_v40  ;;  %v1912_v54 = vmov %v788_v39  }
 0x3b0   : > { %v759_v41 = vpop.trf.xlu0 }
 0x3b1   : > { %775 = vst [vmem:[#allocation2 + $0x18] sm:$0xff] %v759_v41 }
 0x3b4   : > { %v760_v42 = vpop.trf.xlu0 }
 0x3b5   : > { %776 = vst [vmem:[#allocation2 + $0x20] sm:$0xff] %v760_v42 }
 0x3b8   : > { %v761_v43 = vpop.trf.xlu0 }
 0x3b9   : > { %777 = vst [vmem:[#allocation2 + $0x28] sm:$0xff] %v761_v43 }
 0x3bc   : > { %v762_v44 = vpop.trf.xlu0 }
 0x3bd   : > { %778 = vst [vmem:[#allocation2 + $0x30] sm:$0xff] %v762_v44 }
 0x3c0   : > { %v763_v45 = vpop.trf.xlu0 }
 0x3c1   : > { %779 = vst [vmem:[#allocation2 + $0x38] sm:$0xff] %v763_v45 }
 0x3c4   : > { %v764_v46 = vpop.trf.xlu0 }
 0x3c5   : > { %780 = vst [vmem:[#allocation2 + $0x40] sm:$0xff] %v764_v46 }
 0x3c8   : > { %v765_v47 = vpop.trf.xlu0 }
 0x3c9   : > { %781 = vst [vmem:[#allocation2 + $0x48] sm:$0xff] %v765_v47 }
 0x3cc   : > { %v766_v48 = vpop.trf.xlu0 }
 0x3cd   : > { %782 = vst [vmem:[#allocation2 + $0x50] sm:$0xff] %v766_v48 }
 0x3d0   : > { %v767_v49 = vpop.trf.xlu0 }
 0x3d1   : > { %783 = vst [vmem:[#allocation2 + $0x58] sm:$0xff] %v767_v49 }
 0x3d4   : > { %v768_v50 = vpop.trf.xlu0 }
 0x3d5   : > { %784 = vst [vmem:[#allocation2 + $0x60] sm:$0xff] %v768_v50 }
 0x3d8   : > { %v769_v51 = vpop.trf.xlu0 }
 0x3d9   : > { %785 = vst [vmem:[#allocation2 + $0x68] sm:$0xff] %v769_v51 }
 0x3dc   : > { %v770_v52 = vpop.trf.xlu0 }
 0x3dd   : > { %786 = vst [vmem:[#allocation2 + $0x70] sm:$0xff] %v770_v52 }
 0x3e0   : > { %v771_v53 = vpop.trf.xlu0 }
 0x3e1   : > { %787 = vst [vmem:[#allocation2 + $0x78] sm:$0xff] %v771_v53 }
 0x3e2 LB: >> { %s1417_s17 = sshll.u32 %s1918_s14, 3  ;;  %s794_s14 = sadd.s32 1, %s1918_s14   ;;  %s1918_s14 = sphi %s2335_s14, %s794_s14   ;;  %v1914_v54 = vphi %v1912_v54, %v868_v54  }
 0x3e3   : >> { %s799_s28 = scalar_lea.vmem [#allocation3], %s1417_s17  ;;  %s2341_s24 = scalar_lea.vmem [#allocation2], %s1417_s17 }
 0x3e4   : >> { %v800_v55 = vld [vmem:[%s799_s28] sm:$0xff]  ;;  %p791_p4 = scmp.ge.s32.totalorder %s794_s14, 16  }
 0x3e5   : >> { %v801_v56 = vmul.f32 -0.05270463, %v800_v55  ;;  %v2355_v35 = vmov (%p791_p4), 0.0   ;;  %v2357_v36 = vmov (%p791_p4), 0.0   ;;  %s2359_s26 = smov (%p791_p4), 0  }
 0x3e7   : >> { %v802_v57 = vmul.f32 1.442695, %v801_v56 }
 0x3e8   : >> { %v798_v58 = vld [vmem:[%s2341_s24] sm:$0xff] }
 0x3e9   : >> { %1652 = vpow2.f32 %v802_v57  ;;  %v804_v59 = vsub.f32 %v1914_v54, %v798_v58  ;;  %v808_v62 = vrot.slane %v798_v58, 1 }
 0x3f3   : >> { %v1653_v60 = vpop.eup %1652 }
 0x3f4   : >> { %v805_v61 = vmul.f32 %v1653_v60, %v804_v59 }
 0x3f6   : >> { %v806_v63 = vadd.f32 %v805_v61, %v798_v58 }
 0x3f8   : >> { %v810_v0 = vsub.f32 %v806_v63, %v808_v62 }
 0x3fa   : >> { %v812_v1 = vrot.slane %v810_v0, 7 }
 0x3fc   : >> { %v814_v2 = vmul.f32 %v1653_v60, %v812_v1 }
 0x3fe   : >> { %v815_v3 = vadd.f32 %v814_v2, %v798_v58 }
 0x400   : >> { %v816_v4 = vsub.f32 %v815_v3, %v808_v62  ;;  %v853_v20 = vsel %vm394_vm0, %v806_v63, %v815_v3 }
 0x402   : >> { %v818_v5 = vrot.slane %v816_v4, 7 }
 0x404   : >> { %v820_v6 = vmul.f32 %v1653_v60, %v818_v5 }
 0x406   : >> { %v821_v7 = vadd.f32 %v820_v6, %v798_v58 }
 0x408   : >> { %v822_v8 = vsub.f32 %v821_v7, %v808_v62  ;;  %v855_v22 = vsel %vm396_vm1, %v853_v20, %v821_v7 }
 0x40a   : >> { %v824_v9 = vrot.slane %v822_v8, 7 }
 0x40c   : >> { %v826_v10 = vmul.f32 %v1653_v60, %v824_v9 }
 0x40e   : >> { %v827_v11 = vadd.f32 %v826_v10, %v798_v58 }
 0x410   : >> { %v828_v12 = vsub.f32 %v827_v11, %v808_v62  ;;  %v857_v25 = vsel %vm398_vm2, %v855_v22, %v827_v11 }
 0x412   : >> { %v830_v13 = vrot.slane %v828_v12, 7 }
 0x414   : >> { %v832_v14 = vmul.f32 %v1653_v60, %v830_v13 }
 0x416   : >> { %v833_v15 = vadd.f32 %v832_v14, %v798_v58 }
 0x418   : >> { %v834_v16 = vsub.f32 %v833_v15, %v808_v62  ;;  %v859_v27 = vsel %vm400_vm3, %v857_v25, %v833_v15 }
 0x41a   : >> { %v836_v17 = vrot.slane %v834_v16, 7 }
 0x41c   : >> { %v838_v18 = vmul.f32 %v1653_v60, %v836_v17 }
 0x41e   : >> { %v839_v19 = vadd.f32 %v838_v18, %v798_v58 }
 0x420   : >> { %v840_v21 = vsub.f32 %v839_v19, %v808_v62  ;;  %v861_v30 = vsel %vm402_vm4, %v859_v27, %v839_v19 }
 0x422   : >> { %v842_v23 = vrot.slane %v840_v21, 7 }
 0x424   : >> { %v844_v24 = vmul.f32 %v1653_v60, %v842_v23 }
 0x426   : >> { %v845_v26 = vadd.f32 %v844_v24, %v798_v58 }
 0x428   : >> { %v846_v28 = vsub.f32 %v845_v26, %v808_v62  ;;  %v863_v32 = vsel %vm404_vm5, %v861_v30, %v845_v26 }
 0x42a   : >> { %v848_v29 = vrot.slane %v846_v28, 7 }
 0x42b   : > { %793 = sbr.rel (!%p791_p4) target bundleno = 994 (0x3e2), region = 202 }
 0x42c   : >> { %v850_v31 = vmul.f32 %v1653_v60, %v848_v29 }
 0x42e   : >> { %v851_v33 = vadd.f32 %v850_v31, %v798_v58 }
 0x430   : >> { %v865_v34 = vsel %vm406_vm6, %v863_v32, %v851_v33  ;;  %v868_v54 = vrot.slane %v851_v33, 7  }
 0x431   : >> { %866 = vst [vmem:[%s2341_s24] sm:$0xff] %v865_v34 }
 0x432 LB: >> { %s878_s27 = ssub.s32 15, %s1930_s26  ;;  %s875_s26 = sadd.s32 1, %s1930_s26   ;;  %s1930_s26 = sphi %s2359_s26, %s875_s26   ;;  %v1926_v36 = vphi %v2357_v36, %v937_v36   ;;  %v1922_v35 = vphi %v2355_v35, %v1655_v35  }
 0x433   : >> { %s2367_s25 = sshll.u32 %s878_s27, 3  ;;  %p872_p5 = scmp.ge.s32.totalorder %s875_s26, 16  }
 0x434   : >> { %s880_s7 = scalar_lea.vmem [#allocation2], %s2367_s25  ;;  %s882_s8 = scalar_lea.vmem [#allocation3], %s2367_s25 }
 0x435   : >> { %v883_v38 = vld [vmem:[%s882_s8] sm:$0xff]  ;;  %s2406_s16 = smov (%p872_p5), 0  }
 0x436   : >> { %v884_v39 = vmul.f32 -0.05270463, %v883_v38 }
 0x438   : >> { %v881_v37 = vld [vmem:[%s880_s7] sm:$0xff]  ;;  %v885_v41 = vmul.f32 1.442695, %v884_v39 }
 0x439   : >> { %v888_v40 = vrot.slane %v881_v37, 7 }
 0x43a   : >> { %1654 = vpow2.f32 %v885_v41 }
 0x43b   : >> { %v890_v42 = vsub.f32 %v1926_v36, %v888_v40 }
 0x43d   : >> { %v891_v43 = vmul.f32 %v1922_v35, %v890_v42 }
 0x43f   : >> { %v893_v44 = vrot.slane %v891_v43, 1 }
 0x441   : >> { %v895_v45 = vadd.f32 %v893_v44, %v881_v37 }
 0x443   : >> { %v896_v46 = vsub.f32 %v895_v45, %v888_v40 }
 0x444   : >> { %v1655_v35 = vpop.eup %1654  }
 0x445   : >> { %v897_v47 = vmul.f32 %v1655_v35, %v896_v46 }
 0x447   : >> { %v899_v48 = vrot.slane %v897_v47, 1 }
 0x449   : >> { %v901_v49 = vadd.f32 %v899_v48, %v881_v37 }
 0x44b   : >> { %v902_v50 = vsub.f32 %v901_v49, %v888_v40 }
 0x44d   : >> { %v903_v51 = vmul.f32 %v1655_v35, %v902_v50 }
 0x44f   : >> { %v905_v52 = vrot.slane %v903_v51, 1 }
 0x451   : >> { %v907_v53 = vadd.f32 %v905_v52, %v881_v37 }
 0x453   : >> { %v908_v54 = vsub.f32 %v907_v53, %v888_v40 }
 0x455   : >> { %v909_v55 = vmul.f32 %v1655_v35, %v908_v54 }
 0x457   : >> { %v911_v56 = vrot.slane %v909_v55, 1 }
 0x459   : >> { %v913_v57 = vadd.f32 %v911_v56, %v881_v37 }
 0x45b   : >> { %v914_v58 = vsub.f32 %v913_v57, %v888_v40 }
 0x45d   : >> { %v915_v59 = vmul.f32 %v1655_v35, %v914_v58 }
 0x45f   : >> { %v917_v60 = vrot.slane %v915_v59, 1 }
 0x461   : >> { %v919_v61 = vadd.f32 %v917_v60, %v881_v37 }
 0x463   : >> { %v920_v62 = vsub.f32 %v919_v61, %v888_v40 }
 0x465   : >> { %v921_v63 = vmul.f32 %v1655_v35, %v920_v62 }
 0x467   : >> { %v923_v0 = vrot.slane %v921_v63, 1 }
 0x469   : >> { %v925_v1 = vadd.f32 %v923_v0, %v881_v37 }
 0x46b   : >> { %v926_v2 = vsub.f32 %v925_v1, %v888_v40 }
 0x46d   : >> { %v927_v3 = vmul.f32 %v1655_v35, %v926_v2 }
 0x46f   : >> { %v929_v4 = vrot.slane %v927_v3, 1 }
 0x471   : >> { %v931_v5 = vadd.f32 %v929_v4, %v881_v37 }
 0x473   : >> { %v932_v6 = vsub.f32 %v931_v5, %v888_v40 }
 0x475   : >> { %v933_v7 = vmul.f32 %v1655_v35, %v932_v6 }
 0x477   : >> { %v935_v8 = vrot.slane %v933_v7, 1 }
 0x479   : >> { %v937_v36 = vadd.f32 %v935_v8, %v881_v37  }
 0x47b   : >> { %v939_v9 = vsel %vm394_vm0, %v937_v36, %v931_v5 }
 0x47c   : >> { %v941_v10 = vsel %vm396_vm1, %v939_v9, %v925_v1  ;;  %874 = sbr.rel (!%p872_p5) target bundleno = 1074 (0x432), region = 213 }
 0x47d   : >> { %v943_v11 = vsel %vm398_vm2, %v941_v10, %v919_v61 }
 0x47e   : >> { %v945_v12 = vsel %vm400_vm3, %v943_v11, %v913_v57 }
 0x47f   : >> { %v947_v13 = vsel %vm402_vm4, %v945_v12, %v907_v53 }
 0x480   : >> { %v949_v14 = vsel %vm404_vm5, %v947_v13, %v901_v49 }
 0x481   : >> { %v951_v15 = vsel %vm406_vm6, %v949_v14, %v895_v45 }
 0x482   : >> { %952 = vst [vmem:[%s880_s7] sm:$0xff] %v951_v15 }
 0x489   : > { %v953_v16 = vld [vmem:[#allocation2] sm:$0xff]  ;;  %v954_v17 = vld [vmem:[#allocation2 + $0x8] sm:$0xff]  ;;  %v955_v18 = vld [vmem:[#allocation2 + $0x10] sm:$0xff] }
 0x48a   : > { %969 = vxpose.xlu0.b32.start [1/16] %v953_v16, 128  ;;  %v956_v19 = vld [vmem:[#allocation2 + $0x18] sm:$0xff]  ;;  %v957_v20 = vld [vmem:[#allocation2 + $0x20] sm:$0xff]  ;;  %v958_v21 = vld [vmem:[#allocation2 + $0x28] sm:$0xff] }
 0x48b   : > { %v959_v22 = vld [vmem:[#allocation2 + $0x30] sm:$0xff]  ;;  %v960_v23 = vld [vmem:[#allocation2 + $0x38] sm:$0xff]  ;;  %v961_v24 = vld [vmem:[#allocation2 + $0x40] sm:$0xff] }
 0x48c   : > { %v962_v25 = vld [vmem:[#allocation2 + $0x48] sm:$0xff]  ;;  %v963_v26 = vld [vmem:[#allocation2 + $0x50] sm:$0xff]  ;;  %v964_v27 = vld [vmem:[#allocation2 + $0x58] sm:$0xff] }
 0x48d   : > { %v965_v28 = vld [vmem:[#allocation2 + $0x60] sm:$0xff]  ;;  %v966_v29 = vld [vmem:[#allocation2 + $0x68] sm:$0xff]  ;;  %v967_v30 = vld [vmem:[#allocation2 + $0x70] sm:$0xff] }
 0x48e   : > { %970 = vxpose.xlu0.b32.cont [2/16] %v954_v17, 128  ;;  %v968_v31 = vld [vmem:[#allocation2 + $0x78] sm:$0xff] }
 0x492   : > { %971 = vxpose.xlu0.b32.cont [3/16] %v955_v18, 128 }
 0x496   : > { %972 = vxpose.xlu0.b32.cont [4/16] %v956_v19, 128 }
 0x49a   : > { %973 = vxpose.xlu0.b32.cont [5/16] %v957_v20, 128 }
 0x49e   : > { %974 = vxpose.xlu0.b32.cont [6/16] %v958_v21, 128 }
 0x4a2   : > { %975 = vxpose.xlu0.b32.cont [7/16] %v959_v22, 128 }
 0x4a6   : > { %976 = vxpose.xlu0.b32.cont [8/16] %v960_v23, 128 }
 0x4aa   : > { %977 = vxpose.xlu0.b32.cont [9/16] %v961_v24, 128 }
 0x4ae   : > { %978 = vxpose.xlu0.b32.cont [10/16] %v962_v25, 128 }
 0x4b2   : > { %979 = vxpose.xlu0.b32.cont [11/16] %v963_v26, 128 }
 0x4b6   : > { %980 = vxpose.xlu0.b32.cont [12/16] %v964_v27, 128 }
 0x4ba   : > { %981 = vxpose.xlu0.b32.cont [13/16] %v965_v28, 128 }
 0x4be   : > { %982 = vxpose.xlu0.b32.cont [14/16] %v966_v29, 128 }
 0x4c2   : > { %983 = vxpose.xlu0.b32.cont [15/16] %v967_v30, 128 }
 0x4c6   : > { %984 = vxpose.xlu0.b32.end [16/16] %v968_v31, 128 }
 0x50a   : > { %v985_v32 = vpop.trf.xlu0 }
 0x50b   : > { %1001 = vst [vmem:[%s2187_s20] sm:$0xff] %v985_v32 }
 0x50e   : > { %v986_v33 = vpop.trf.xlu0 }
 0x50f   : > { %1002 = vst [vmem:[%s2187_s20 + $0x8] sm:$0xff] %v986_v33 }
 0x512   : > { %v1017_v34 = vld [vmem:[%s2187_s20] sm:$0x1]   ;;  %v987_v35 = vpop.trf.xlu0 }
 0x513   : > { %1003 = vst [vmem:[%s2187_s20 + $0x10] sm:$0xff] %v987_v35  ;;  %v1932_v49 = vmov %v1017_v34  }
 0x516   : > { %v988_v36 = vpop.trf.xlu0 }
 0x517   : > { %1004 = vst [vmem:[%s2187_s20 + $0x18] sm:$0xff] %v988_v36 }
 0x51a   : > { %v989_v37 = vpop.trf.xlu0 }
 0x51b   : > { %1005 = vst [vmem:[%s2187_s20 + $0x20] sm:$0xff] %v989_v37 }
 0x51e   : > { %v990_v38 = vpop.trf.xlu0 }
 0x51f   : > { %1006 = vst [vmem:[%s2187_s20 + $0x28] sm:$0xff] %v990_v38 }
 0x522   : > { %v991_v39 = vpop.trf.xlu0 }
 0x523   : > { %1007 = vst [vmem:[%s2187_s20 + $0x30] sm:$0xff] %v991_v39 }
 0x526   : > { %v992_v40 = vpop.trf.xlu0 }
 0x527   : > { %1008 = vst [vmem:[%s2187_s20 + $0x38] sm:$0xff] %v992_v40 }
 0x52a   : > { %v993_v41 = vpop.trf.xlu0 }
 0x52b   : > { %1009 = vst [vmem:[%s2187_s20 + $0x40] sm:$0xff] %v993_v41 }
 0x52e   : > { %v994_v42 = vpop.trf.xlu0 }
 0x52f   : > { %1010 = vst [vmem:[%s2187_s20 + $0x48] sm:$0xff] %v994_v42 }
 0x532   : > { %v995_v43 = vpop.trf.xlu0 }
 0x533   : > { %1011 = vst [vmem:[%s2187_s20 + $0x50] sm:$0xff] %v995_v43 }
 0x536   : > { %v996_v44 = vpop.trf.xlu0 }
 0x537   : > { %1012 = vst [vmem:[%s2187_s20 + $0x58] sm:$0xff] %v996_v44 }
 0x53a   : > { %v997_v45 = vpop.trf.xlu0 }
 0x53b   : > { %1013 = vst [vmem:[%s2187_s20 + $0x60] sm:$0xff] %v997_v45 }
 0x53e   : > { %v998_v46 = vpop.trf.xlu0 }
 0x53f   : > { %1014 = vst [vmem:[%s2187_s20 + $0x68] sm:$0xff] %v998_v46 }
 0x542   : > { %v999_v47 = vpop.trf.xlu0 }
 0x543   : > { %1015 = vst [vmem:[%s2187_s20 + $0x70] sm:$0xff] %v999_v47 }
 0x546   : > { %v1000_v48 = vpop.trf.xlu0 }
 0x547   : > { %1016 = vst [vmem:[%s2187_s20 + $0x78] sm:$0xff] %v1000_v48 }
 0x548 LB: >> { %s1419_s4 = sshll.u32 %s1938_s16, 3  ;;  %s1023_s16 = sadd.s32 1, %s1938_s16   ;;  %s1938_s16 = sphi %s2406_s16, %s1023_s16   ;;  %v1934_v49 = vphi %v1932_v49, %v1097_v49  }
 0x549   : >> { %s1028_s3 = scalar_lea.vmem %s2148_s29, %s1419_s4 [#allocation7]  ;;  %s2414_s19 = scalar_lea.vmem %s2187_s20, %s1419_s4 [#allocation9] }
 0x54a   : >> { %v1029_v50 = vld [vmem:[%s1028_s3] sm:$0xff]  ;;  %p1020_p10 = scmp.ge.s32.totalorder %s1023_s16, 16  }
 0x54b   : >> { %v1030_v51 = vmul.f32 -0.05270463, %v1029_v50  ;;  %v2428_v30 = vmov (%p1020_p10), 0.0   ;;  %v2430_v31 = vmov (%p1020_p10), 0.0   ;;  %s2432_s23 = smov (%p1020_p10), 0  }
 0x54d   : >> { %v1031_v52 = vmul.f32 1.442695, %v1030_v51 }
 0x54e   : >> { %v1027_v53 = vld [vmem:[%s2414_s19] sm:$0xff] }
 0x54f   : >> { %1656 = vpow2.f32 %v1031_v52  ;;  %v1033_v54 = vsub.f32 %v1934_v49, %v1027_v53  ;;  %v1037_v57 = vrot.slane %v1027_v53, 1 }
 0x559   : >> { %v1657_v55 = vpop.eup %1656 }
 0x55a   : >> { %v1034_v56 = vmul.f32 %v1657_v55, %v1033_v54 }
 0x55c   : >> { %v1035_v58 = vadd.f32 %v1034_v56, %v1027_v53 }
 0x55e   : >> { %v1039_v59 = vsub.f32 %v1035_v58, %v1037_v57 }
 0x560   : >> { %v1041_v60 = vrot.slane %v1039_v59, 7 }
 0x562   : >> { %v1043_v61 = vmul.f32 %v1657_v55, %v1041_v60 }
 0x564   : >> { %v1044_v62 = vadd.f32 %v1043_v61, %v1027_v53 }
 0x566   : >> { %v1045_v63 = vsub.f32 %v1044_v62, %v1037_v57  ;;  %v1082_v15 = vsel %vm394_vm0, %v1035_v58, %v1044_v62 }
 0x568   : >> { %v1047_v0 = vrot.slane %v1045_v63, 7 }
 0x56a   : >> { %v1049_v1 = vmul.f32 %v1657_v55, %v1047_v0 }
 0x56c   : >> { %v1050_v2 = vadd.f32 %v1049_v1, %v1027_v53 }
 0x56e   : >> { %v1051_v3 = vsub.f32 %v1050_v2, %v1037_v57  ;;  %v1084_v17 = vsel %vm396_vm1, %v1082_v15, %v1050_v2 }
 0x570   : >> { %v1053_v4 = vrot.slane %v1051_v3, 7 }
 0x572   : >> { %v1055_v5 = vmul.f32 %v1657_v55, %v1053_v4 }
 0x574   : >> { %v1056_v6 = vadd.f32 %v1055_v5, %v1027_v53 }
 0x576   : >> { %v1057_v7 = vsub.f32 %v1056_v6, %v1037_v57  ;;  %v1086_v20 = vsel %vm398_vm2, %v1084_v17, %v1056_v6 }
 0x578   : >> { %v1059_v8 = vrot.slane %v1057_v7, 7 }
 0x57a   : >> { %v1061_v9 = vmul.f32 %v1657_v55, %v1059_v8 }
 0x57c   : >> { %v1062_v10 = vadd.f32 %v1061_v9, %v1027_v53 }
 0x57e   : >> { %v1063_v11 = vsub.f32 %v1062_v10, %v1037_v57  ;;  %v1088_v22 = vsel %vm400_vm3, %v1086_v20, %v1062_v10 }
 0x580   : >> { %v1065_v12 = vrot.slane %v1063_v11, 7 }
 0x582   : >> { %v1067_v13 = vmul.f32 %v1657_v55, %v1065_v12 }
 0x584   : >> { %v1068_v14 = vadd.f32 %v1067_v13, %v1027_v53 }
 0x586   : >> { %v1069_v16 = vsub.f32 %v1068_v14, %v1037_v57  ;;  %v1090_v25 = vsel %vm402_vm4, %v1088_v22, %v1068_v14 }
 0x588   : >> { %v1071_v18 = vrot.slane %v1069_v16, 7 }
 0x58a   : >> { %v1073_v19 = vmul.f32 %v1657_v55, %v1071_v18 }
 0x58c   : >> { %v1074_v21 = vadd.f32 %v1073_v19, %v1027_v53 }
 0x58e   : >> { %v1075_v23 = vsub.f32 %v1074_v21, %v1037_v57  ;;  %v1092_v27 = vsel %vm404_vm5, %v1090_v25, %v1074_v21 }
 0x590   : >> { %v1077_v24 = vrot.slane %v1075_v23, 7 }
 0x591   : > { %1022 = sbr.rel (!%p1020_p10) target bundleno = 1352 (0x548), region = 224 }
 0x592   : >> { %v1079_v26 = vmul.f32 %v1657_v55, %v1077_v24 }
 0x594   : >> { %v1080_v28 = vadd.f32 %v1079_v26, %v1027_v53 }
 0x596   : >> { %v1094_v29 = vsel %vm406_vm6, %v1092_v27, %v1080_v28  ;;  %v1097_v49 = vrot.slane %v1080_v28, 7  }
 0x597   : >> { %1095 = vst [vmem:[%s2414_s19] sm:$0xff] %v1094_v29 }
 0x598 LB: >> { %s1107_s5 = ssub.s32 15, %s1950_s23  ;;  %s1104_s23 = sadd.s32 1, %s1950_s23   ;;  %s1950_s23 = sphi %s2432_s23, %s1104_s23   ;;  %v1946_v31 = vphi %v2430_v31, %v1166_v31   ;;  %v1942_v30 = vphi %v2428_v30, %v1659_v30  }
 0x599   : >> { %s1420_s6 = sshll.u32 %s1107_s5, 3  ;;  %p1101_p11 = scmp.ge.s32.totalorder %s1104_s23, 16  }
 0x59a   : >> { %s2441_s14 = scalar_lea.vmem %s2187_s20, %s1420_s6 [#allocation9]  ;;  %s1111_s17 = scalar_lea.vmem %s2148_s29, %s1420_s6 [#allocation7] }
 0x59b   : >> { %v1112_v33 = vld [vmem:[%s1111_s17] sm:$0xff]  ;;  %s1428_s28 = sshll.u32 (%p1101_p11), %s1995_s13, 11  ;;  %s1196_s25 = sshll.u32 (%p1101_p11), %s2187_s20, 4  ;;  %s2467_s25 = int_to_ptr.vmem [resolvable:$true] %s1196_s25 }
 0x59c   : >> { %v1113_v34 = vmul.f32 -0.05270463, %v1112_v33  ;;  %s2464_s27 = scalar_lea.hbm (%p1101_p11), %s2512_s2, %s1428_s28  ;;  %s1183_s7 = scalar_lea.sflag (%p1101_p11), [#allocation6], %s2133_s30 }
 0x59d   : > { %s1720_s8 = scalar_lea.vmem (%p1101_p11), %s2467_s25, 2048  ;;  %p2522_p8 = scmp.ne.s32.totalorder (%p1101_p11), %s2517_s21, 0 }
 0x59e   : >> { %v1110_v32 = vld [vmem:[%s2441_s14] sm:$0xff]  ;;  %v1114_v36 = vmul.f32 1.442695, %v1113_v34  ;;  %p1721_p7 = scmp.ne.s32.totalorder (%p1101_p11), %s2467_s25, %s1720_s8  ;;  %s1956_s29 = smov (%p1101_p11), [#allocation9]  }
 0x59f   : >> { %v1117_v35 = vrot.slane %v1110_v32, 7  ;;  %s1724_s16 = sshll.u32 (%p1101_p11), %s1956_s29, 4  ;;  %s1725_s16 = int_to_ptr.vmem [resolvable:$false] %s1724_s16 }
 0x5a0   : >> { %1658 = vpow2.f32 %v1114_v36  ;;  %p1722_p13 = pnand (%p1101_p11), %p1721_p7, %p2522_p8  ;;  %s1726_s13 = scalar_lea.vmem (%p1101_p11), %s1725_s16, 4096 }
 0x5a1   : >> { %v1119_v37 = vsub.f32 %v1946_v31, %v1117_v35  ;;  %p1727_p3 = scmp.lt.s32.totalorder (%p1101_p11), %s2467_s25, %s1725_s16  ;;  %p1728_p6 = scmp.lt.s32.totalorder (%p1101_p11), %s1726_s13, %s1720_s8 }
 0x5a2   : > { %p1723_p1 = pneg (%p1101_p11), %p1722_p13 }
 0x5a3   : >> { %v1120_v38 = vmul.f32 %v1942_v30, %v1119_v37  ;;  %p1729_p12 = por (%p1101_p11), %p1728_p6, %p1727_p3 }
 0x5a5   : >> { %v1122_v39 = vrot.slane %v1120_v38, 1  ;;  %p1730_p0 = pnand (%p1101_p11), %p1729_p12, %p1723_p1 }
 0x5a7   : >> { %v1124_v40 = vadd.f32 %v1122_v39, %v1110_v32 }
 0x5a9   : >> { %v1125_v41 = vsub.f32 %v1124_v40, %v1117_v35 }
 0x5aa   : >> { %v1659_v30 = vpop.eup %1658  }
 0x5ab   : >> { %v1126_v42 = vmul.f32 %v1659_v30, %v1125_v41 }
 0x5ad   : >> { %v1128_v43 = vrot.slane %v1126_v42, 1 }
 0x5af   : >> { %v1130_v44 = vadd.f32 %v1128_v43, %v1110_v32 }
 0x5b1   : >> { %v1131_v45 = vsub.f32 %v1130_v44, %v1117_v35 }
 0x5b3   : >> { %v1132_v46 = vmul.f32 %v1659_v30, %v1131_v45 }
 0x5b5   : >> { %v1134_v47 = vrot.slane %v1132_v46, 1 }
 0x5b7   : >> { %v1136_v48 = vadd.f32 %v1134_v47, %v1110_v32 }
 0x5b9   : >> { %v1137_v49 = vsub.f32 %v1136_v48, %v1117_v35 }
 0x5bb   : >> { %v1138_v50 = vmul.f32 %v1659_v30, %v1137_v49 }
 0x5bd   : >> { %v1140_v51 = vrot.slane %v1138_v50, 1 }
 0x5bf   : >> { %v1142_v52 = vadd.f32 %v1140_v51, %v1110_v32 }
 0x5c1   : >> { %v1143_v53 = vsub.f32 %v1142_v52, %v1117_v35 }
 0x5c3   : >> { %v1144_v54 = vmul.f32 %v1659_v30, %v1143_v53 }
 0x5c5   : >> { %v1146_v55 = vrot.slane %v1144_v54, 1 }
 0x5c7   : >> { %v1148_v56 = vadd.f32 %v1146_v55, %v1110_v32 }
 0x5c9   : >> { %v1149_v57 = vsub.f32 %v1148_v56, %v1117_v35 }
 0x5cb   : >> { %v1150_v58 = vmul.f32 %v1659_v30, %v1149_v57 }
 0x5cd   : >> { %v1152_v59 = vrot.slane %v1150_v58, 1 }
 0x5cf   : >> { %v1154_v60 = vadd.f32 %v1152_v59, %v1110_v32 }
 0x5d1   : >> { %v1155_v61 = vsub.f32 %v1154_v60, %v1117_v35 }
 0x5d3   : >> { %v1156_v62 = vmul.f32 %v1659_v30, %v1155_v61 }
 0x5d5   : >> { %v1158_v63 = vrot.slane %v1156_v62, 1 }
 0x5d7   : >> { %v1160_v0 = vadd.f32 %v1158_v63, %v1110_v32 }
 0x5d9   : >> { %v1161_v1 = vsub.f32 %v1160_v0, %v1117_v35 }
 0x5db   : >> { %v1162_v2 = vmul.f32 %v1659_v30, %v1161_v1 }
 0x5dd   : >> { %v1164_v3 = vrot.slane %v1162_v2, 1 }
 0x5df   : >> { %v1166_v31 = vadd.f32 %v1164_v3, %v1110_v32  }
 0x5e1   : >> { %v1168_v4 = vsel %vm394_vm0, %v1166_v31, %v1160_v0 }
 0x5e2   : >> { %v1170_v5 = vsel %vm396_vm1, %v1168_v4, %v1154_v60  ;;  %1103 = sbr.rel (!%p1101_p11) target bundleno = 1432 (0x598), region = 235 }
 0x5e3   : >> { %v1172_v6 = vsel %vm398_vm2, %v1170_v5, %v1148_v56 }
 0x5e4   : >> { %v1174_v7 = vsel %vm400_vm3, %v1172_v6, %v1142_v52 }
 0x5e5   : >> { %v1176_v8 = vsel %vm402_vm4, %v1174_v7, %v1136_v48 }
 0x5e6   : >> { %v1178_v9 = vsel %vm404_vm5, %v1176_v8, %v1130_v44 }
 0x5e7   : >> { %v1180_v10 = vsel %vm406_vm6, %v1178_v9, %v1124_v40 }
 0x5e8   : >> { %1181 = vst [vmem:[%s2441_s14] sm:$0xff] %v1180_v10 }
 0x5e9   : > { %1733 = shalt.err (!%p1730_p0)
}
 0x5ea   : > { %s1734_s20 = scalar_lea.hbm %s2464_s27, 2048  ;;  %s1738_s19 = scalar_lea.hbm %s2512_s2, 16384 }
 0x5eb   : > { %p1735_p2 = scmp.ne.s32.totalorder %s2464_s27, %s1734_s20  ;;  %p1739_p5 = scmp.lt.u32.totalorder %s2464_s27, %s2512_s2 }
 0x5ec   : > { %p1740_p10 = scmp.lt.u32.totalorder %s1738_s19, %s1734_s20  ;;  %p1742_p7 = scmp.lt.u32.totalorder %s1734_s20, %s2464_s27 }
 0x5ed   : > { %p1736_p9 = pnand %p1735_p2, %p2522_p8 }
 0x5ee   : > { %p1741_p11 = por %p1740_p10, %p1739_p5 }
 0x5ef   : > { %p1737_p4 = pneg %p1736_p9 }
 0x5f0   : > { %p1743_p13 = por %p1742_p7, %p1741_p11 }
 0x5f2   : > { %p1744_p1 = pnand %p1743_p13, %p1737_p4 }
 0x5f4   : > { %1747 = shalt.err (!%p1744_p1)
}
 0x5f5   : > { %s1957_s6 = smov 128   ;;  %s1958_s14 = smov 8  }
 0x5f6   : > { %1433 = dma.vmem_to_hbm [thread:$0]  (%p2522_p8), %s2467_s25, 2048, %s2464_s27, %s1183_s7, %s1957_s6, %s1957_s6, %s1958_s14  }
 0x5f7 PF: > { %p1447_p3 = scmp.ge.s32.totalorder %s1870_s12, 2  ;;  %s1211_s17 = sand.u32 1, %s1858_s9  }
 0x5f8   : > { %p2523_p6 = scmp.ne.s32.totalorder %s2518_s22, 0  ;;  %s1212_s28 = scalar_lea.sflag [#allocation6], %s1211_s17 }
 0x5fa   : > { %p1443_p12 = pnand %p1447_p3, %p2523_p6 }
 0x5fc   : > { %1853 = dma.done.wait (!%p1443_p12), %s1212_s28, 2048  }
 0x5fd   : > { %1855 = vsyncadd (!%p1443_p12), %s1212_s28, 4294965248  ;;  %p18_p0 = scmp.ge.s32.totalorder %s1999_s15, 10   ;;  %s2524_s9 = smov %s1862_s10 }
 0x5fe   : > { %s2525_s10 = smov %s1866_s11  ;;  %s2526_s11 = smov %s2011_s18 }
 0x5ff   : > { %s2527_s12 = smov %s1999_s15  ;;  %20 = sbr.rel (!%p18_p0) target bundleno = 7 (0x7), region = 246 }
 0x606   :  { %1217 = vsyncpa [#allocation5], 1 }
 0x607   :  { %1219 = vsyncpa [#allocation5 + $0x1], 1 }
 0x608   :  { %1220 = vsyncpa [#allocation8], 1 }
 0x609   :  { %1222 = vsyncpa [#allocation8 + $0x1], 1 }
 0x60a   :  { %1223 = vsyncpa [#allocation6], 1 }
 0x60b   :  { %1225 = vsyncpa [#allocation6 + $0x1], 1 }

</bundles_post_ra>
